<compile_context>
chip_gen: v6e
topology: v6e:2x2x1
jax: 0.10.0
libtpu: 0.0.40
codegen_flags: <defaults>
</compile_context>

<pallas_src>
import functools

import jax
import jax.numpy as jnp
from jax.experimental import pallas as pl
from jax.experimental.pallas import tpu as pltpu

H = 768          # LLM_INPUT_DICT['roberta']
MID = 352        # linear1 out_features (module spec)
MID_PAD = 384    # padded to a multiple of 128 lanes; extra columns are exact zeros
SEQ = 16         # small synthetic sequence length (module pads to 500)
B = 256          # batch of answer rows per call
M_TILE = 128     # rows per grid step (grid = B/M_TILE = 2 -> both v7x TCs busy)
LANE_OUT = 128   # lane-dense output slab width (sliced back to 1 in the wrapper)


def head_kernel(idx_ref,        # (B,) int32      -- scalar prefetch, SMEM
                hid_ref,        # (B*SEQ, H) f32  -- memory_space=ANY, stays in HBM
                w1_ref,         # (H, MID_PAD) bf16        -- grid-resident
                b1_ref,         # (1, MID_PAD) f32
                w2_ref,         # (MID_PAD, LANE_OUT) f32  -- estimator weight, lane-replicated
                b2_ref,         # (1, 1) f32
                o_ref,          # (M_TILE, LANE_OUT) f32
                x_buf,          # VMEM scratch (M_TILE, H) f32
                sem,            # DMA semaphore (1,)
                *, seq_len, m_tile):
    t = pl.program_id(0)
    base = t * m_tile

    # ---- In-kernel gather: one small DMA per answer row, all in flight at once.
    @pl.loop(0, m_tile)
    def _issue(r):
        row = base + r
        flat = row * seq_len + idx_ref[row]          # row-major (example, token) -> flat row
        pltpu.make_async_copy(hid_ref.at[pl.ds(flat, 1)],
                              x_buf.at[pl.ds(r, 1)],
                              sem.at[0]).start()

    # Single aggregate wait: every row DMA above signals sem[0]; one descriptor
    # sized for the full tile consumes all m_tile completions at once.
    pltpu.make_async_copy(hid_ref.at[pl.ds(0, m_tile)], x_buf, sem.at[0]).wait()

    # MaxPool1d(kernel_size=1, stride=1) is the identity -> nothing to do.
    x = x_buf[...].astype(jnp.bfloat16)                                   # (M_TILE, H)

    # linear1 (bf16 weights, f32 accumulate on the MXU) + ReLU
    h = jnp.dot(x, w1_ref[...], preferred_element_type=jnp.float32)       # (M_TILE, MID_PAD)
    h = jnp.maximum(h + b1_ref[...], 0.0)

    # Dropout(p=0.5): eval mode -> identity.

    # estimator (out_features == 1): second MXU pass against the lane-replicated
    # weight matrix; every output lane carries the same scalar, so the result is
    # directly the lane-dense store slab (no VPU multiply / XLU reduce / broadcast).
    o_ref[...] = jnp.dot(h, w2_ref[...],
                         preferred_element_type=jnp.float32) + b2_ref[...]


def factuality_head_batched(hidden_output, answer_idx, params):
    """Batched fused head: gather(answer row) -> Linear -> ReLU -> Linear.

    hidden_output: (B, SEQ, H) f32 -- output.last_hidden_state for B examples.
    answer_idx   : (B,) int32      -- answer_indices[0] per example (0 = the
                                      module's "no answer found" fallback row).
    """
    b, s, h = hidden_output.shape
    assert b % M_TILE == 0 and h == H
    w1, b1, w2_rep, b2 = params
    hid_flat = hidden_output.reshape(b * s, h)
    # Clamp so a bad/out-of-range index can never issue an OOB HBM DMA.
    idx = jnp.clip(answer_idx.astype(jnp.int32), 0, s - 1)

    kernel = functools.partial(head_kernel, seq_len=s, m_tile=M_TILE)
    grid_spec = pltpu.PrefetchScalarGridSpec(
        num_scalar_prefetch=1,
        grid=(b // M_TILE,),
        in_specs=[
            pl.BlockSpec(memory_space=pl.ANY),                          # hidden stays in HBM
            pl.BlockSpec((H, MID_PAD), lambda t, idx: (0, 0)),          # W1 resident across grid
            pl.BlockSpec((1, MID_PAD), lambda t, idx: (0, 0)),          # b1
            pl.BlockSpec((MID_PAD, LANE_OUT), lambda t, idx: (0, 0)),   # w2 (lane-replicated)
            pl.BlockSpec((1, 1), lambda t, idx: (0, 0)),                # b2
        ],
        out_specs=pl.BlockSpec((M_TILE, LANE_OUT), lambda t, idx: (t, 0)),
        scratch_shapes=[
            pltpu.VMEM((M_TILE, H), jnp.float32),
            pltpu.SemaphoreType.DMA((1,)),
        ],
    )
    out = pl.pallas_call(
        kernel,
        out_shape=jax.ShapeDtypeStruct((b, LANE_OUT), jnp.float32),
        grid_spec=grid_spec,
        compiler_params=pltpu.CompilerParams(
            dimension_semantics=("parallel",)),   # batch tiles split across TCs on v7x
    )(idx, hid_flat, w1, b1, w2_rep, b2)
    return out[:, :1]                                                   # (B, 1)


def init_params(key):
    """nn.Linear-default init U(-1/sqrt(fan_in), +); pad MID 352->384 with zeros
    (bit-identical result), cast W1 to bf16 for the DMA-bound weight load, and
    replicate the estimator weight across 128 lanes for the MXU second pass."""
    k1, k2, k3, k4 = jax.random.split(key, 4)
    bound1 = 1.0 / (H ** 0.5)
    bound2 = 1.0 / (MID ** 0.5)
    w1 = jax.random.uniform(k1, (H, MID), jnp.float32, -bound1, bound1)
    b1 = jax.random.uniform(k2, (MID,), jnp.float32, -bound1, bound1)
    w2 = jax.random.uniform(k3, (MID,), jnp.float32, -bound2, bound2)   # estimator weight (out=1)
    b2 = jax.random.uniform(k4, (1,), jnp.float32, -bound2, bound2)

    w1_p = jnp.zeros((H, MID_PAD), jnp.float32).at[:, :MID].set(w1).astype(jnp.bfloat16)
    b1_p = jnp.zeros((1, MID_PAD), jnp.float32).at[:, :MID].set(b1)
    w2_pad = jnp.zeros((MID_PAD,), jnp.float32).at[:MID].set(w2)
    w2_rep = jnp.tile(w2_pad[:, None], (1, LANE_OUT))                   # (MID_PAD, LANE_OUT)
    b2_p = b2.reshape(1, 1)
    kernel_params = (w1_p, b1_p, w2_rep, b2_p)
    master_params = (w1, b1, w2, b2)
    return kernel_params, master_params


if __name__ == "__main__":
    key = jax.random.PRNGKey(0)
    k_hidden, k_idx, k_params = jax.random.split(key, 3)

    # Synthetic last_hidden_state batch from the (external, untranslatable) LLM,
    # plus per-example answer token index from the string-alignment step.
    hidden_output = jax.random.normal(k_hidden, (B, SEQ, H), jnp.float32)
    answer_idx = jax.random.randint(k_idx, (B,), 0, SEQ, dtype=jnp.int32)

    kernel_params, master_params = init_params(k_params)

    fwd = jax.jit(factuality_head_batched)
    out = jax.block_until_ready(fwd(hidden_output, answer_idx, kernel_params))

    # Pure-JAX reference with identical numerics (bf16 W1, f32 accumulate), using
    # the UNPADDED weights -- also validates that the 352->384 zero padding and the
    # lane-replicated MXU projection are exact.
    w1, b1, w2, b2 = master_params
    x_ref = hidden_output[jnp.arange(B), answer_idx].astype(jnp.bfloat16)       # (B, H)
    h_ref = jnp.dot(x_ref, w1.astype(jnp.bfloat16),
                    preferred_element_type=jnp.float32) + b1
    h_ref = jnp.maximum(h_ref, 0.0)
    ref = jnp.sum(h_ref * w2[None, :], axis=-1, keepdims=True) + b2[None, :]    # (B, 1)

    assert out.shape == (B, 1), out.shape
    assert jnp.allclose(out, ref, atol=2e-3, rtol=2e-3), \
        float(jnp.max(jnp.abs(out - ref)))
    print("KERNEL_OK")
</pallas_src>

<mosaic_0001>
module attributes {stable_mosaic.version = 11 : i64} {
  func.func @head_kernel(%arg0: i32, %arg1: memref<256xi32, #tpu.memory_space<smem>>, %arg2: memref<4096x768xf32, #tpu.memory_space<any>>, %arg3: memref<768x384xbf16, #tpu.memory_space<vmem>>, %arg4: memref<1x384xf32, #tpu.memory_space<vmem>>, %arg5: memref<384x128xf32, #tpu.memory_space<vmem>>, %arg6: memref<1x1xf32, #tpu.memory_space<vmem>>, %arg7: memref<128x128xf32, #tpu.memory_space<vmem>>, %arg8: memref<128x768xf32, #tpu.memory_space<vmem>>, %arg9: memref<1x!tpu.dma_semaphore, #tpu.memory_space<semaphore_mem>>) attributes {dimension_semantics = [#tpu.dimension_semantics<parallel>], iteration_bounds = array<i64: 2>, scalar_prefetch = 1 : i64, scratch_operands = 2 : i64, tpu.core_type = #tpu.core_type<tc>, window_params = [{}, {pipeline_mode = #tpu.pipeline_mode<synchronous>, transform_indices = @transform_1, window_bounds = array<i64: 768, 384>}, {pipeline_mode = #tpu.pipeline_mode<synchronous>, transform_indices = @transform_2, window_bounds = array<i64: 1, 384>}, {pipeline_mode = #tpu.pipeline_mode<synchronous>, transform_indices = @transform_3, window_bounds = array<i64: 384, 128>}, {pipeline_mode = #tpu.pipeline_mode<synchronous>, transform_indices = @transform_4, window_bounds = array<i64: 1, 1>}, {transform_indices = @transform_5, window_bounds = array<i64: 128, 128>}]} {
    %c128_i32 = arith.constant 128 : i32
    %0 = arith.muli %arg0, %c128_i32 : i32
    %c0_i32 = arith.constant 0 : i32
    %c128_i32_0 = arith.constant 128 : i32
    %1 = arith.addi %c0_i32, %c128_i32_0 : i32
    %c1_i32 = arith.constant 1 : i32
    scf.for %arg10 = %c0_i32 to %1 step %c1_i32  : i32 {
      %c1_i32_18 = arith.constant 1 : i32
      %20 = arith.muli %arg10, %c1_i32_18 : i32
      %c0_i32_19 = arith.constant 0 : i32
      %21 = arith.addi %c0_i32_19, %20 : i32
      %22 = arith.addi %0, %21 : i32
      %c16_i32 = arith.constant 16 : i32
      %23 = arith.muli %22, %c16_i32 : i32
      %24 = arith.index_cast %22 : i32 to index
      %25 = memref.load %arg1[%24] : memref<256xi32, #tpu.memory_space<smem>>
      %26 = arith.addi %23, %25 : i32
      %c0_i32_20 = arith.constant 0 : i32
      %c0_i32_21 = arith.constant 0 : i32
      %27 = tpu.memref_slice %arg2[%26, %c0_i32_21] : memref<4096x768xf32, #tpu.memory_space<any>> -> memref<1x768xf32, #tpu.memory_space<any>>
      %c0_i32_22 = arith.constant 0 : i32
      %28 = tpu.memref_slice %arg8[%21, %c0_i32_22] : memref<128x768xf32, #tpu.memory_space<vmem>> -> memref<1x768xf32, #tpu.memory_space<vmem>>
      %29 = tpu.memref_slice %arg9[%c0_i32_20] : memref<1x!tpu.dma_semaphore, #tpu.memory_space<semaphore_mem>> -> memref<1x!tpu.dma_semaphore, #tpu.memory_space<semaphore_mem>>
      %30 = tpu.memref_squeeze %29 : memref<1x!tpu.dma_semaphore, #tpu.memory_space<semaphore_mem>> -> memref<!tpu.dma_semaphore, #tpu.memory_space<semaphore_mem>>
      tpu.enqueue_dma source(%27 : memref<1x768xf32, #tpu.memory_space<any>>) target(%28 : memref<1x768xf32, #tpu.memory_space<vmem>>) target_semaphore(%30 : memref<!tpu.dma_semaphore, #tpu.memory_space<semaphore_mem>>)
    }
    %c128_i32_1 = arith.constant 128 : i32
    %c0_i32_2 = arith.constant 0 : i32
    %c0_i32_3 = arith.constant 0 : i32
    %c0_i32_4 = arith.constant 0 : i32
    %2 = tpu.memref_slice %arg2[%c0_i32_3, %c0_i32_4] : memref<4096x768xf32, #tpu.memory_space<any>> -> memref<128x768xf32, #tpu.memory_space<any>>
    %3 = tpu.memref_slice %arg9[%c0_i32_2] : memref<1x!tpu.dma_semaphore, #tpu.memory_space<semaphore_mem>> -> memref<1x!tpu.dma_semaphore, #tpu.memory_space<semaphore_mem>>
    %4 = tpu.memref_squeeze %3 : memref<1x!tpu.dma_semaphore, #tpu.memory_space<semaphore_mem>> -> memref<!tpu.dma_semaphore, #tpu.memory_space<semaphore_mem>>
    tpu.wait_dma2 semaphore(%4 : memref<!tpu.dma_semaphore, #tpu.memory_space<semaphore_mem>>) src(%2 : memref<128x768xf32, #tpu.memory_space<any>>) dst(%arg8 : memref<128x768xf32, #tpu.memory_space<vmem>>)
    %c0 = arith.constant 0 : index
    %c0_5 = arith.constant 0 : index
    %5 = vector.load %arg8[%c0, %c0_5] : memref<128x768xf32, #tpu.memory_space<vmem>>, vector<128x768xf32>
    %6 = arith.truncf %5 : vector<128x768xf32> to vector<128x768xbf16>
    %c0_6 = arith.constant 0 : index
    %c0_7 = arith.constant 0 : index
    %7 = vector.load %arg3[%c0_6, %c0_7] : memref<768x384xbf16, #tpu.memory_space<vmem>>, vector<768x384xbf16>
    %cst = arith.constant dense<0.000000e+00> : vector<128x384xf32>
    %8 = tpu.matmul %6, %7, %cst {dimension_numbers = #tpu.dot_dimension_numbers<[1], [0], [0], [1], [0, 0, 1, 1], [], []>} : vector<128x768xbf16>, vector<768x384xbf16>, vector<128x384xf32> -> vector<128x384xf32>
    %c0_8 = arith.constant 0 : index
    %c0_9 = arith.constant 0 : index
    %9 = vector.load %arg4[%c0_8, %c0_9] : memref<1x384xf32, #tpu.memory_space<vmem>>, vector<1x384xf32>
    %10 = vector.broadcast %9 : vector<1x384xf32> to vector<128x384xf32>
    %11 = arith.addf %8, %10 : vector<128x384xf32>
    %cst_10 = arith.constant 0.000000e+00 : f32
    %12 = vector.broadcast %cst_10 : f32 to vector<128x384xf32>
    %13 = arith.maximumf %11, %12 : vector<128x384xf32>
    %c0_11 = arith.constant 0 : index
    %c0_12 = arith.constant 0 : index
    %14 = vector.load %arg5[%c0_11, %c0_12] : memref<384x128xf32, #tpu.memory_space<vmem>>, vector<384x128xf32>
    %cst_13 = arith.constant dense<0.000000e+00> : vector<128x128xf32>
    %15 = tpu.matmul %13, %14, %cst_13 {dimension_numbers = #tpu.dot_dimension_numbers<[1], [0], [0], [1], [0, 0, 1, 1], [], []>} : vector<128x384xf32>, vector<384x128xf32>, vector<128x128xf32> -> vector<128x128xf32>
    %c0_14 = arith.constant 0 : index
    %c0_15 = arith.constant 0 : index
    %16 = vector.load %arg6[%c0_14, %c0_15] : memref<1x1xf32, #tpu.memory_space<vmem>>, vector<1x1xf32>
    %17 = vector.broadcast %16 : vector<1x1xf32> to vector<128x128xf32>
    %18 = arith.addf %15, %17 : vector<128x128xf32>
    %c0_16 = arith.constant 0 : index
    %c0_17 = arith.constant 0 : index
    %19 = vector.load %arg7[%c0_16, %c0_17] : memref<128x128xf32, #tpu.memory_space<vmem>>, vector<128x128xf32>
    tpu.vector_store %arg7[%c0_16, %c0_17], %18 {strides = array<i32>} : memref<128x128xf32, #tpu.memory_space<vmem>>, vector<128x128xf32>,
    return
  }
  func.func @transform_1(%arg0: i32, %arg1: memref<256xi32, #tpu.memory_space<smem>>) -> (i32, i32) {
    %c0_i32 = arith.constant 0 : i32
    %c0_i32_0 = arith.constant 0 : i32
    %c0_i32_1 = arith.constant 0 : i32
    return %c0_i32, %c0_i32_0 : i32, i32
  }
  func.func @transform_2(%arg0: i32, %arg1: memref<256xi32, #tpu.memory_space<smem>>) -> (i32, i32) {
    %c0_i32 = arith.constant 0 : i32
    %c0_i32_0 = arith.constant 0 : i32
    %c0_i32_1 = arith.constant 0 : i32
    return %c0_i32, %c0_i32_0 : i32, i32
  }
  func.func @transform_3(%arg0: i32, %arg1: memref<256xi32, #tpu.memory_space<smem>>) -> (i32, i32) {
    %c0_i32 = arith.constant 0 : i32
    %c0_i32_0 = arith.constant 0 : i32
    %c0_i32_1 = arith.constant 0 : i32
    return %c0_i32, %c0_i32_0 : i32, i32
  }
  func.func @transform_4(%arg0: i32, %arg1: memref<256xi32, #tpu.memory_space<smem>>) -> (i32, i32) {
    %c0_i32 = arith.constant 0 : i32
    %c0_i32_0 = arith.constant 0 : i32
    %c0_i32_1 = arith.constant 0 : i32
    return %c0_i32, %c0_i32_0 : i32, i32
  }
  func.func @transform_5(%arg0: i32, %arg1: memref<256xi32, #tpu.memory_space<smem>>) -> (i32, i32) {
    %c0_i32 = arith.constant 0 : i32
    %c0_i32_0 = arith.constant 0 : i32
    return %arg0, %c0_i32 : i32, i32
  }
}

</mosaic_0001>

<bundles_post_ra>
// kernel: factuality_head_batched.1
= control target key start
LH: loop header
LB: loop body
LE: loop exit
PB: predicated region body
PF: predicated region fallthrough
CT: control target
= control target key end

     0   :  { %s4166_s0 = inlined_call_operand.vmem [shape: s32[256], index: 0, kind: input, shape index: {}]   ;;  %s4167_s1 = inlined_call_operand.hbm [shape: f32[4096,768], index: 1, kind: input, shape index: {}]   ;;  %s4168_s2 = inlined_call_operand.hbm [shape: bf16[768,384], index: 2, kind: input, shape index: {}]   ;;  %s4169_s3 = inlined_call_operand.hbm [shape: f32[1,384], index: 3, kind: input, shape index: {}]   ;;  %s4170_s4 = inlined_call_operand.hbm [shape: f32[384,128], index: 4, kind: input, shape index: {}]   ;;  %s4171_s6 = inlined_call_operand.vmem [shape: f32[256,128], index: 6, kind: output, shape index: {}]   ;;  %s4172_s5 = inlined_call_operand.<no memory space> [shape: f32[1,1], index: 5, kind: input, shape index: {}]  }
   0x1   :  { %s11_s23 = sshll.u32 %s4166_s0, 4  ;;  %v15_v0 = vstv %s4172_s5  ;;  %s12_s23 = int_to_ptr.vmem [resolvable:$true] %s11_s23 }
   0x2   :  { %16 = vst [vmem:[#allocation6] sm:$0x1] %v15_v0  ;;  %s3290_s26 = scalar_lea.vmem %s12_s23, 32  ;;  %p3295_p1 = scmp.lt.s32.totalorder %s12_s23, %s12_s23 }
   0x3   :  { %p3291_p0 = scmp.ne.s32.totalorder %s12_s23, %s3290_s26  ;;  %p3296_p2 = scmp.lt.s32.totalorder %s3290_s26, %s3290_s26 }
   0x5   :  { %p3297_p3 = por %p3296_p2, %p3295_p1 }
   0x7   :  { %p3298_p4 = pnand %p3297_p3, %p3291_p0 }
   0x9   :  { %3301 = shalt.err (!%p3298_p4)  }
   0xa   :  { %s3430_s27 = smov [#allocation5]  }
   0xb   :  { %14 = dma.vmem_to_smem %s12_s23, 32, %s3430_s27, [#allocation4] }
   0xc   :  { %3410 = dma.done.wait [#allocation4], 32 }
   0xd   :  { %3411 = vsyncadd [#allocation4], 4294967264 }
   0xe   :  { %18 = sfence }
   0xf   :  { %19 = vsyncpa [#allocation8], 0 }
  0x10   :  { %20 = vsyncpa [#allocation10], 0  ;;  %s3483_s0 = smov 0  }
  0x11 LB: > { %s3431_s5 = smov [#allocation9]   ;;  %s3489_s29 = sadd.s32 4294967295, %s3424_s0   ;;  %s3424_s0 = sphi %s3483_s0, %s26_s0  }
  0x12   : > { %s167_s28 = sshll.u32 %s3431_s5, 4  ;;  %p2521_p5 = scmp.ge.s32.totalorder %s3424_s0, 1  ;;  %s168_s28 = int_to_ptr.vmem [resolvable:$true] %s167_s28 }
  0x13   : > { %p141_p6 = scmp.lt.s32.totalorder %s3424_s0, 3  ;;  %p3064_p7 = scmp.eq.s32.totalorder %s3489_s29, 0 }
  0x14   : > { %s3432_s7 = smov [#allocation7]   ;;  %s3433_s10 = smov [#allocation11]  }
  0x15   : > { %p3494_p8 = pnand %p2521_p5, %p141_p6  ;;  %s153_s8 = sshll.u32 %s3432_s7, 4  ;;  %s3500_s8 = int_to_ptr.vmem [resolvable:$true] %s153_s8 }
  0x16   : > { %s177_s11 = sshll.u32 %s3433_s10, 4  ;;  %s3313_s12 = scalar_lea.vmem %s168_s28, 48  ;;  %s3508_s11 = int_to_ptr.vmem [resolvable:$true] %s177_s11 }
  0x17   : > { %p3054_p9 = pneg %p3494_p8  ;;  %p3314_p12 = scmp.ne.s32.totalorder %s168_s28, %s3313_s12 }
  0x18   : > { %s3320_s13 = scalar_lea.vmem %s168_s28, 64  ;;  %p3321_p1 = scmp.lt.s32.totalorder %s168_s28, %s168_s28 }
  0x19   : > { %p3504_p10 = pnand %p3064_p7, %p3054_p9  ;;  %p3322_p2 = scmp.lt.s32.totalorder %s3320_s13, %s3313_s12 }
  0x1b   : > { %p3304_p11 = pneg %p3504_p10  ;;  %p3323_p3 = por %p3322_p2, %p3321_p1 }
  0x1d   : > { %p3316_p13 = pnand %p3314_p12, %p3304_p11 }
  0x1f   : > { %p3317_p0 = pneg %p3316_p13 }
  0x21   : > { %p3324_p4 = pnand %p3323_p3, %p3317_p0 }
  0x23   : > { %3327 = shalt.err (!%p3324_p4)
}
  0x24   : > { %3060 = dma.hbm_to_vmem [thread:$0]  (!%p3504_p10), %s4169_s3, 48, %s168_s28, [#allocation10]  }
  0x25   : > { %s3339_s16 = scalar_lea.vmem %s3500_s8, 18432  ;;  %p3347_p12 = scmp.lt.s32.totalorder %s3500_s8, %s3500_s8 }
  0x26   : > { %p3340_p5 = scmp.ne.s32.totalorder %s3500_s8, %s3339_s16  ;;  %p3348_p13 = scmp.lt.s32.totalorder %s3339_s16, %s3339_s16 }
  0x28   : > { %p3342_p6 = pnand %p3340_p5, %p3304_p11  ;;  %p3349_p0 = por %p3348_p13, %p3347_p12 }
  0x2a   : > { %p3343_p9 = pneg %p3342_p6 }
  0x2c   : > { %p3350_p1 = pnand %p3349_p0, %p3343_p9 }
  0x2e   : > { %3353 = shalt.err (!%p3350_p1)
}
  0x2f   : > { %s3434_s17 = smov 192   ;;  %s3435_s18 = smov 12  }
  0x30   : > { %3057 = dma.hbm_to_vmem [thread:$0]  (!%p3504_p10), %s4168_s2, 18432, %s3500_s8, [#allocation8], %s3434_s17, %s3434_s17, %s3435_s18  }
  0x31   : > { %s3365_s21 = scalar_lea.vmem %s3508_s11, 6144  ;;  %p3373_p5 = scmp.lt.s32.totalorder %s3508_s11, %s3508_s11 }
  0x32   : > { %p3366_p2 = scmp.ne.s32.totalorder %s3508_s11, %s3365_s21  ;;  %p3374_p6 = scmp.lt.s32.totalorder %s3365_s21, %s3365_s21 }
  0x34   : > { %p3368_p3 = pnand %p3366_p2, %p3304_p11  ;;  %p3375_p9 = por %p3374_p6, %p3373_p5 }
  0x36   : > { %p3369_p4 = pneg %p3368_p3 }
  0x38   : > { %p3376_p12 = pnand %p3375_p9, %p3369_p4 }
  0x3a   : > { %3379 = shalt.err (!%p3376_p12)
}
  0x3b   : > { %s3436_s22 = smov 128   ;;  %s3437_s23 = smov 8  }
  0x3c   : > { %3063 = dma.hbm_to_vmem [thread:$0]  (!%p3504_p10), %s4170_s4, 6144, %s3508_s11, [#allocation10], %s3436_s22, %s3436_s22, %s3437_s23  }
  0x3d   : > { %196 = sbr.rel (%p3494_p8) target bundleno = 772 (0x304), region = 36 }
  0x42   : > { %3413 = dma.done.wait (%p3064_p7), [#allocation8], 18432  }
  0x43   : > { %3415 = vsyncadd (%p3064_p7), [#allocation8], 4294948864 }
  0x44   : > { %3417 = dma.done.wait (%p3064_p7), [#allocation10], 6192  }
  0x45   : > { %3419 = vsyncadd (%p3064_p7), [#allocation10], 4294961104  ;;  %s2529_s26 = sshll.u32 %s3489_s29, 4  ;;  %s2531_s27 = sshll.u32 %s3489_s29, 7 }
  0x46   : > { %p226_p10 = scmp.lt.s32.totalorder %s2529_s26, 31  ;;  %s3563_s8 = smov 0  }
  0x48   : > { %s4209_s26 = smov (!%p226_p10, %s2529_s26), 31 }
  0x49   : > { %s2530_s5 = sshll.u32 %s4209_s26, 3 }
  0x4a   : > { %s3561_s7 = scalar_lea.vmem %s4171_s6, %s2530_s5 }
  0x4b LB: >> { %s239_s9 = sadd.s32 %s3428_s8, %s2531_s27  ;;  %s249_s10 = sshrl.u32 %s3428_s8, 3  ;;  %s3428_s8 = sphi %s3563_s8, %s238_s8  }
  0x4c   : >> { %s241_s11 = sld [smem:[#allocation5 + %s239_s9]]  ;;  %s250_s12 = sand.u32 7, %s3428_s8  }
  0x4d   : >> { %s251_s13 = smul.u32 48, %s249_s10  ;;  %s2532_s14 = sshll.u32 %s239_s9, 4 }
  0x4e   : >> { %s3382_s9 = scalar_lea.hbm %s4167_s1, 393216 }
  0x4f   : >> { %s252_s15 = sadd.s32 %s251_s13, %s250_s12 }
  0x50   : >> { %s253_s17 = scalar_lea.vmem [#allocation2], %s252_s15 }
  0x51   : >> { %s255_s18 = sshll.u32 %s253_s17, 4  ;;  %s256_s18 = int_to_ptr.vmem [resolvable:$true] %s255_s18 }
  0x52   : >> { %s242_s16 = sadd.s32 %s2532_s14, %s241_s11 }
  0x53   : >> { %s243_s19 = sshrl.u32 %s242_s16, 3  ;;  %s244_s20 = sand.u32 7, %s242_s16  }
  0x54   : >> { %s245_s21 = smul.u32 48, %s243_s19 }
  0x56   : >> { %s246_s22 = sadd.s32 %s245_s21, %s244_s20 }
  0x57   : >> { %s2533_s23 = sshll.u32 %s246_s22, 4 }
  0x58   : >> { %s248_s26 = scalar_lea.hbm %s4167_s1, %s2533_s23 }
  0x59   : >> { %s3380_s5 = scalar_lea.hbm %s248_s26, 96  ;;  %p3383_p8 = scmp.lt.s32.totalorder %s248_s26, %s4167_s1 }
  0x5a   : >> { %p3381_p7 = scmp.ne.s32.totalorder %s248_s26, %s3380_s5  ;;  %p3384_p11 = scmp.lt.s32.totalorder %s3382_s9, %s3380_s5 }
  0x5c   : >> { %p3385_p13 = por %p3384_p11, %p3383_p8 }
  0x5e   : >> { %p3386_p0 = pnand %p3385_p13, %p3381_p7 }
  0x60   : >> { %3389 = shalt.err (!%p3386_p0)  }
  0x61   : >> { %s3390_s12 = scalar_lea.vmem %s256_s18, 96  ;;  %s3438_s13 = smov [#allocation2]  }
  0x62   : >> { %p3391_p1 = scmp.ne.s32.totalorder %s256_s18, %s3390_s12  ;;  %s3392_s14 = sshll.u32 %s3438_s13, 4  ;;  %s3393_s14 = int_to_ptr.vmem [resolvable:$false] %s3392_s14 }
  0x63   : >> { %s3394_s15 = scalar_lea.vmem %s3393_s14, 12288  ;;  %p3395_p2 = scmp.lt.s32.totalorder %s256_s18, %s3393_s14 }
  0x64   : >> { %p3396_p3 = scmp.lt.s32.totalorder %s3394_s15, %s3390_s12 }
  0x66   : >> { %p3397_p4 = por %p3396_p3, %p3395_p2 }
  0x68   : >> { %p3398_p5 = pnand %p3397_p4, %p3391_p1 }
  0x6a   : >> { %3401 = shalt.err (!%p3398_p5)  }
  0x6b   : >> { %s3439_s16 = smov 128   ;;  %s3440_s17 = smov 1  }
  0x6c   : >> { %258 = dma.hbm_to_vmem [thread:$0]  %s248_s26, 96, %s256_s18, [#allocation3], %s3439_s16, %s3439_s16, %s3440_s17 }
  0x6d   : >> { %s238_s8 = sadd.s32 1, %s3428_s8  }
  0x6e   : >> { %p235_p6 = scmp.ge.s32.totalorder %s238_s8, 128  }
  0x70   : > { %237 = sbr.rel (!%p235_p6) target bundleno = 75 (0x4b), region = 85 }
  0x75   : > { %3420 = dma.done.wait [#allocation3], 12288 }
  0x76   : > { %3421 = vsyncadd [#allocation3], 4294955008  ;;  %v3098_v1 = vld [vmem:[#allocation7 + $0xac] ss:$12 sps:$4 sm:$0xff]   ;;  %v3102_v3 = vld [vmem:[#allocation7 + $0xa8] ss:$12 sps:$4 sm:$0xff]  }
  0x77   : > { %v3100_v2 = vld [vmem:[#allocation7 + $0x22c] ss:$12 sps:$4 sm:$0xff]   ;;  %1384 = vmatprep.subr.bf16.mxu0 %v3098_v1  ;;  %v3103_v4 = vld [vmem:[#allocation7 + $0x228] ss:$12 sps:$4 sm:$0xff]   ;;  %v3108_v7 = vld [vmem:[#allocation7 + $0x90] ss:$12 sps:$4 sm:$0xff]  }
  0x78   : > { %1497 = vmatprep.subr.bf16.mxu1 %v3100_v2  ;;  %v3104_v5 = vld [vmem:[#allocation7 + $0x94] ss:$12 sps:$4 sm:$0xff]   ;;  %1385 = vmatpush1.bf16.msra.mxu0 %v3102_v3  ;;  %v3109_v8 = vld [vmem:[#allocation7 + $0x210] ss:$12 sps:$4 sm:$0xff]   ;;  %v3114_v11 = vld [vmem:[#allocation7 + $0x78] ss:$12 sps:$4 sm:$0xff]  }
  0x79   : > { %1498 = vmatpush1.bf16.msra.mxu1 %v3103_v4  ;;  %v3106_v6 = vld [vmem:[#allocation7 + $0x214] ss:$12 sps:$4 sm:$0xff]   ;;  %1386 = vmatprep.subr.bf16.mxu0 %v3104_v5  ;;  %v3110_v9 = vld [vmem:[#allocation7 + $0x7c] ss:$12 sps:$4 sm:$0xff]   ;;  %v3115_v12 = vld [vmem:[#allocation7 + $0x1f8] ss:$12 sps:$4 sm:$0xff]  }
  0x7a   : > { %1499 = vmatprep.subr.bf16.mxu1 %v3106_v6  ;;  %v3112_v10 = vld [vmem:[#allocation7 + $0x1fc] ss:$12 sps:$4 sm:$0xff]   ;;  %v3116_v13 = vld [vmem:[#allocation7 + $0x64] ss:$12 sps:$4 sm:$0xff]   ;;  %v3120_v15 = vld [vmem:[#allocation7 + $0x60] ss:$12 sps:$4 sm:$0xff]  }
  0x7b   : > { %v3118_v14 = vld [vmem:[#allocation7 + $0x1e4] ss:$12 sps:$4 sm:$0xff]   ;;  %v3121_v16 = vld [vmem:[#allocation7 + $0x1e0] ss:$12 sps:$4 sm:$0xff]   ;;  %v3126_v19 = vld [vmem:[#allocation7 + $0x48] ss:$12 sps:$4 sm:$0xff]  }
  0x7c   : > { %1387 = vmatpush1.bf16.msra.mxu0 %v3108_v7  ;;  %v3122_v17 = vld [vmem:[#allocation7 + $0x4c] ss:$12 sps:$4 sm:$0xff]   ;;  %v3127_v20 = vld [vmem:[#allocation7 + $0x1c8] ss:$12 sps:$4 sm:$0xff]   ;;  %v3132_v23 = vld [vmem:[#allocation7 + $0x30] ss:$12 sps:$4 sm:$0xff]  }
  0x7d   : > { %1500 = vmatpush1.bf16.msra.mxu1 %v3109_v8  ;;  %1388 = vmatprep.subr.bf16.mxu0 %v3110_v9  ;;  %v3124_v18 = vld [vmem:[#allocation7 + $0x1cc] ss:$12 sps:$4 sm:$0xff]   ;;  %v3128_v21 = vld [vmem:[#allocation7 + $0x34] ss:$12 sps:$4 sm:$0xff]   ;;  %v3133_v24 = vld [vmem:[#allocation7 + $0x1b0] ss:$12 sps:$4 sm:$0xff]  }
  0x7e   : > { %1501 = vmatprep.subr.bf16.mxu1 %v3112_v10  ;;  %v3130_v22 = vld [vmem:[#allocation7 + $0x1b4] ss:$12 sps:$4 sm:$0xff]   ;;  %v3134_v25 = vld [vmem:[#allocation7 + $0x1c] ss:$12 sps:$4 sm:$0xff]   ;;  %v3138_v27 = vld [vmem:[#allocation7 + $0x18] ss:$12 sps:$4 sm:$0xff]  }
  0x7f   : > { %v3136_v26 = vld [vmem:[#allocation7 + $0x19c] ss:$12 sps:$4 sm:$0xff]   ;;  %v3139_v28 = vld [vmem:[#allocation7 + $0x198] ss:$12 sps:$4 sm:$0xff]   ;;  %v3144_v31 = vld [vmem:[#allocation7] ss:$12 sps:$4 sm:$0xff]  }
  0x80   : > { %1389 = vmatpush1.bf16.msra.mxu0 %v3114_v11  ;;  %v3140_v29 = vld [vmem:[#allocation7 + $0x4] ss:$12 sps:$4 sm:$0xff]   ;;  %v3145_v32 = vld [vmem:[#allocation7 + $0x180] ss:$12 sps:$4 sm:$0xff]   ;;  %v3150_v35 = vld [vmem:[#allocation7 + $0x168] ss:$12 sps:$4 sm:$0xff]  }
  0x81   : > { %1502 = vmatpush1.bf16.msra.mxu1 %v3115_v12  ;;  %1390 = vmatprep.subr.bf16.mxu0 %v3116_v13  ;;  %v3142_v30 = vld [vmem:[#allocation7 + $0x184] ss:$12 sps:$4 sm:$0xff]   ;;  %v3146_v33 = vld [vmem:[#allocation7 + $0x16c] ss:$12 sps:$4 sm:$0xff]   ;;  %v3151_v36 = vld [vmem:[#allocation7 + $0x2e8] ss:$12 sps:$4 sm:$0xff]  }
  0x82   : > { %1503 = vmatprep.subr.bf16.mxu1 %v3118_v14  ;;  %v3148_v34 = vld [vmem:[#allocation7 + $0x2ec] ss:$12 sps:$4 sm:$0xff]   ;;  %v3152_v37 = vld [vmem:[#allocation7 + $0x154] ss:$12 sps:$4 sm:$0xff]   ;;  %v3156_v39 = vld [vmem:[#allocation7 + $0x150] ss:$12 sps:$4 sm:$0xff]  }
  0x83   : > { %v3154_v38 = vld [vmem:[#allocation7 + $0x2d4] ss:$12 sps:$4 sm:$0xff]   ;;  %v3157_v40 = vld [vmem:[#allocation7 + $0x2d0] ss:$12 sps:$4 sm:$0xff]   ;;  %v3162_v43 = vld [vmem:[#allocation7 + $0x138] ss:$12 sps:$4 sm:$0xff]  }
  0x84   : > { %1391 = vmatpush1.bf16.msra.mxu0 %v3120_v15  ;;  %v3158_v41 = vld [vmem:[#allocation7 + $0x13c] ss:$12 sps:$4 sm:$0xff]   ;;  %v3163_v44 = vld [vmem:[#allocation7 + $0x2b8] ss:$12 sps:$4 sm:$0xff]   ;;  %v3168_v51 = vld [vmem:[#allocation7 + $0x120] ss:$12 sps:$4 sm:$0xff]  }
  0x85   : > { %1504 = vmatpush1.bf16.msra.mxu1 %v3121_v16  ;;  %1392 = vmatprep.subr.bf16.mxu0 %v3122_v17  ;;  %v3160_v42 = vld [vmem:[#allocation7 + $0x2bc] ss:$12 sps:$4 sm:$0xff]   ;;  %v3164_v45 = vld [vmem:[#allocation7 + $0x124] ss:$12 sps:$4 sm:$0xff]   ;;  %v3169_v52 = vld [vmem:[#allocation7 + $0x2a0] ss:$12 sps:$4 sm:$0xff]  }
  0x86   : > { %1505 = vmatprep.subr.bf16.mxu1 %v3124_v18  ;;  %v3166_v46 = vld [vmem:[#allocation7 + $0x2a4] ss:$12 sps:$4 sm:$0xff]   ;;  %v270_v48 = vld [vmem:[#allocation2 + $0x38] sm:$0xff]  ;;  %v3192_v5 = vld [vmem:[#allocation7 + $0xc0] ss:$12 sps:$4 sm:$0xff]  }
  0x87   : > { %v264_v47 = vld [vmem:[#allocation2 + $0x8] sm:$0xff]  ;;  %v266_v49 = vld [vmem:[#allocation2 + $0x18] sm:$0xff]  ;;  %v263_v7 = vld [vmem:[#allocation2] sm:$0xff] }
  0x88   : > { %1393 = vmatpush1.bf16.msra.mxu0 %v3126_v19  ;;  %v272_v50 = vld [vmem:[#allocation2 + $0x48] sm:$0xff]  ;;  %v3585_v54 = vpack.c.bf16 %v270_v48, %v264_v47  ;;  %v3176_v59 = vld [vmem:[#allocation7 + $0xf4] ss:$12 sps:$4 sm:$0xff]   ;;  %v3180_v61 = vld [vmem:[#allocation7 + $0xf0] ss:$12 sps:$4 sm:$0xff]  }
  0x89   : > { %1506 = vmatpush1.bf16.msra.mxu1 %v3127_v20  ;;  %1394 = vmatprep.subr.bf16.mxu0 %v3128_v21  ;;  %v3170_v53 = vld [vmem:[#allocation7 + $0x10c] ss:$12 sps:$4 sm:$0xff]   ;;  %v3587_v55 = vpack.c.bf16 %v272_v50, %v266_v49  ;;  %v3174_v57 = vld [vmem:[#allocation7 + $0x108] ss:$12 sps:$4 sm:$0xff]   ;;  %v3181_v62 = vld [vmem:[#allocation7 + $0x270] ss:$12 sps:$4 sm:$0xff]  }
  0x8a   : > { %1507 = vmatprep.subr.bf16.mxu1 %v3130_v22  ;;  %v3172_v56 = vld [vmem:[#allocation7 + $0x28c] ss:$12 sps:$4 sm:$0xff]   ;;  %1416 = vmatprep.mubr.bf16.mxu0 %v3585_v54  ;;  %v3175_v58 = vld [vmem:[#allocation7 + $0x288] ss:$12 sps:$4 sm:$0xff]   ;;  %v3188_v3 = vld [vmem:[#allocation7 + $0xc4] ss:$12 sps:$4 sm:$0xff]  }
  0x8b   : > { %1529 = vmatprep.mubr.bf16.mxu1 %v3587_v55  ;;  %v3178_v60 = vld [vmem:[#allocation7 + $0x274] ss:$12 sps:$4 sm:$0xff]   ;;  %v3182_v63 = vld [vmem:[#allocation7 + $0xdc] ss:$12 sps:$4 sm:$0xff]   ;;  %v3186_v1 = vld [vmem:[#allocation7 + $0xd8] ss:$12 sps:$4 sm:$0xff]  }
  0x8c   : > { %1395 = vmatpush1.bf16.msra.mxu0 %v3132_v23  ;;  %v3184_v0 = vld [vmem:[#allocation7 + $0x25c] ss:$12 sps:$4 sm:$0xff]   ;;  %v3187_v2 = vld [vmem:[#allocation7 + $0x258] ss:$12 sps:$4 sm:$0xff]   ;;  %v3193_v6 = vld [vmem:[#allocation7 + $0x240] ss:$12 sps:$4 sm:$0xff]  }
  0x8d   : > { %1508 = vmatpush1.bf16.msra.mxu1 %v3133_v24  ;;  %1396 = vmatprep.subr.bf16.mxu0 %v3134_v25  ;;  %v3190_v4 = vld [vmem:[#allocation7 + $0x244] ss:$12 sps:$4 sm:$0xff]   ;;  %v3196_v11 = vld [vmem:[#allocation7 + $0x3ac] ss:$12 sps:$4 sm:$0xff]   ;;  %v3194_v19 = vld [vmem:[#allocation7 + $0x3a8] ss:$12 sps:$4 sm:$0xff]  }
  0x8e   : > { %1509 = vmatprep.subr.bf16.mxu1 %v3136_v26  ;;  %v269_v8 = vld [vmem:[#allocation2 + $0x30] sm:$0xff]  ;;  %v271_v10 = vld [vmem:[#allocation2 + $0x40] sm:$0xff]  ;;  %v276_v13 = vld [vmem:[#allocation2 + $0x68] sm:$0xff] }
  0x8f   : > { %v265_v9 = vld [vmem:[#allocation2 + $0x10] sm:$0xff]  ;;  %v282_v14 = vld [vmem:[#allocation2 + $0x98] sm:$0xff]  ;;  %v3591_v16 = vpack.c.bf16 %v269_v8, %v263_v7  ;;  %v284_v18 = vld [vmem:[#allocation2 + $0xa8] sm:$0xff] }
  0x90   : > { %1397 = vmatpush1.bf16.msra.mxu0 %v3138_v27  ;;  %v3197_v12 = vld [vmem:[#allocation7 + $0x170] ss:$12 sps:$4 sm:$0xff]   ;;  %v3593_v17 = vpack.c.bf16 %v271_v10, %v265_v9  ;;  %v3201_v21 = vld [vmem:[#allocation7 + $0x394] ss:$12 sps:$4 sm:$0xff]   ;;  %v3595_v22 = vpack.c.bf16 %v282_v14, %v276_v13  ;;  %v3212_v49 = vld [vmem:[#allocation7 + $0x34c] ss:$12 sps:$4 sm:$0xff]  }
  0x91   : > { %1510 = vmatpush1.bf16.msra.mxu1 %v3139_v28  ;;  %1398 = vmatprep.subr.bf16.mxu0 %v3140_v29  ;;  %v278_v15 = vld [vmem:[#allocation2 + $0x78] sm:$0xff]  ;;  %v275_v25 = vld [vmem:[#allocation2 + $0x60] sm:$0xff]  ;;  %v281_v26 = vld [vmem:[#allocation2 + $0x90] sm:$0xff] }
  0x92   : > { %1511 = vmatprep.subr.bf16.mxu1 %v3142_v30  ;;  %v3198_v20 = vld [vmem:[#allocation7 + $0xb0] ss:$12 sps:$4 sm:$0xff]   ;;  %v3597_v24 = vpack.c.bf16 %v284_v18, %v278_v15  ;;  %v3205_v29 = vld [vmem:[#allocation7 + $0x158] ss:$12 sps:$4 sm:$0xff]   ;;  %v3214_v48 = vld [vmem:[#allocation7 + $0x80] ss:$12 sps:$4 sm:$0xff]  }
  0x93   : > { %v3199_v23 = vld [vmem:[#allocation7 + $0x390] ss:$12 sps:$4 sm:$0xff]   ;;  %v3206_v30 = vld [vmem:[#allocation7 + $0x98] ss:$12 sps:$4 sm:$0xff]  }
  0x94   : > { %1399 = vmatpush1.bf16.msra.mxu0 %v3144_v31  ;;  %v277_v27 = vld [vmem:[#allocation2 + $0x70] sm:$0xff]  ;;  %v283_v28 = vld [vmem:[#allocation2 + $0xa0] sm:$0xff]  ;;  %v300_v50 = vld [vmem:[#allocation2 + $0x128] sm:$0xff] }
  0x95   : > { %1512 = vmatpush1.bf16.msra.mxu1 %v3145_v32  ;;  %1400 = vmatprep.subr.bf16.mxu0 %v3146_v33  ;;  %v3204_v31 = vld [vmem:[#allocation7 + $0x37c] ss:$12 sps:$4 sm:$0xff]   ;;  %v3237_v9 = vld [vmem:[#allocation7 + $0xf8] ss:$12 sps:$4 sm:$0xff]  }
  0x96   : > { %1513 = vmatprep.subr.bf16.mxu1 %v3148_v34  ;;  %v288_v32 = vld [vmem:[#allocation2 + $0xc8] sm:$0xff]  ;;  %v294_v33 = vld [vmem:[#allocation2 + $0xf8] sm:$0xff]  ;;  %v295_v47 = vld [vmem:[#allocation2 + $0x100] sm:$0xff] }
  0x97   : > { %v290_v34 = vld [vmem:[#allocation2 + $0xd8] sm:$0xff]  ;;  %v312_v7 = vld [vmem:[#allocation2 + $0x188] sm:$0xff] }
  0x98   : > { %1401 = vmatpush2.bf16.msra.mxu0 %v3150_v35  ;;  %v3213_v35 = vld [vmem:[#allocation7 + $0x140] ss:$12 sps:$4 sm:$0xff]   ;;  %v3230_v8 = vld [vmem:[#allocation7 + $0x50] ss:$12 sps:$4 sm:$0xff]   ;;  %v3218_v15 = vld [vmem:[#allocation7 + $0x318] ss:$12 sps:$4 sm:$0xff]  }
  0x99   : > { %1514 = vmatpush2.bf16.msra.mxu1 %v3151_v36  ;;  %1402 = vmatprep.subr.bf16.mxu0 %v3152_v37  ;;  %v296_v36 = vld [vmem:[#allocation2 + $0x108] sm:$0xff]  ;;  %v3603_v37 = vpack.c.bf16 %v281_v26, %v275_v25  ;;  %v318_v10 = vld [vmem:[#allocation2 + $0x1b8] sm:$0xff]  ;;  %v317_v25 = vld [vmem:[#allocation2 + $0x1b0] sm:$0xff] }
  0x9a   : > { %1515 = vmatprep.subr.bf16.mxu1 %v3154_v38  ;;  %v3605_v38 = vpack.c.bf16 %v283_v28, %v277_v27  ;;  %v3631_v18 = vpack.c.bf16 %v318_v10, %v312_v7  ;;  %v313_v26 = vld [vmem:[#allocation2 + $0x190] sm:$0xff]  ;;  %v319_v27 = vld [vmem:[#allocation2 + $0x1c0] sm:$0xff] }
  0x9b   : > { %v3238_v28 = vld [vmem:[#allocation7 + $0x38] ss:$12 sps:$4 sm:$0xff]   ;;  %v3260_v10 = vld [vmem:[#allocation7 + $0x470] ss:$12 sps:$4 sm:$0xff]  }
  0x9c   : > { %1403 = vmatpush2.bf16.msra.mxu0 %v3156_v39  ;;  %v3202_v39 = vld [vmem:[#allocation7 + $0x378] ss:$12 sps:$4 sm:$0xff]  }
  0x9d   : > { %1516 = vmatpush2.bf16.msra.mxu1 %v3157_v40  ;;  %1404 = vmatprep.subr.bf16.mxu0 %v3158_v41  ;;  %v3607_v40 = vpack.c.bf16 %v294_v33, %v288_v32  ;;  %v3209_v41 = vld [vmem:[#allocation7 + $0x364] ss:$12 sps:$4 sm:$0xff]   ;;  %v330_v32 = vld [vmem:[#allocation2 + $0x218] sm:$0xff] }
  0x9e   : > { %1517 = vmatprep.subr.bf16.mxu1 %v3160_v42  ;;  %v3609_v42 = vpack.c.bf16 %v296_v36, %v290_v34  ;;  %v326_v33 = vld [vmem:[#allocation2 + $0x1f8] sm:$0xff]  ;;  %v332_v34 = vld [vmem:[#allocation2 + $0x228] sm:$0xff]  ;;  %v335_v7 = vld [vmem:[#allocation2 + $0x240] sm:$0xff] }
  0xa0   : > { %1405 = vmatpush2.bf16.msra.mxu0 %v3162_v43  ;;  %v3207_v43 = vld [vmem:[#allocation7 + $0x360] ss:$12 sps:$4 sm:$0xff]  }
  0xa1   : > { %1518 = vmatpush2.bf16.msra.mxu1 %v3163_v44  ;;  %1406 = vmatprep.subr.bf16.mxu0 %v3164_v45  ;;  %v287_v44 = vld [vmem:[#allocation2 + $0xc0] sm:$0xff]  ;;  %v293_v45 = vld [vmem:[#allocation2 + $0xf0] sm:$0xff] }
  0xa2   : > { %1519 = vmatprep.subr.bf16.mxu1 %v3166_v46  ;;  %v289_v46 = vld [vmem:[#allocation2 + $0xd0] sm:$0xff] }
  0xa4   : > { %1407 = vmatpush2.bf16.msra.mxu0 %v3168_v51  ;;  %v306_v51 = vld [vmem:[#allocation2 + $0x158] sm:$0xff] }
  0xa5   : > { %1520 = vmatpush2.bf16.msra.mxu1 %v3169_v52  ;;  %1408 = vmatprep.subr.bf16.mxu0 %v3170_v53  ;;  %v3221_v52 = vld [vmem:[#allocation7 + $0x128] ss:$12 sps:$4 sm:$0xff]  }
  0xa6   : > { %1521 = vmatprep.subr.bf16.mxu1 %v3172_v56  ;;  %v302_v53 = vld [vmem:[#allocation2 + $0x138] sm:$0xff]  ;;  %v308_v56 = vld [vmem:[#allocation2 + $0x168] sm:$0xff] }
  0xa8   : > { %1409 = vmatpush2.bf16.msra.mxu0 %v3174_v57  ;;  %v3222_v57 = vld [vmem:[#allocation7 + $0x68] ss:$12 sps:$4 sm:$0xff]  }
  0xa9   : > { %1522 = vmatpush2.bf16.msra.mxu1 %v3175_v58  ;;  %1410 = vmatprep.subr.bf16.mxu0 %v3176_v59  ;;  %v3615_v58 = vpack.c.bf16 %v293_v45, %v287_v44  ;;  %v3617_v59 = vpack.c.bf16 %v295_v47, %v289_v46  ;;  %v3233_v44 = vld [vmem:[#allocation7 + $0x454] ss:$12 sps:$4 sm:$0xff]   ;;  %v3645_v45 = vpack.c.bf16 %v332_v34, %v326_v33  ;;  %v3231_v46 = vld [vmem:[#allocation7 + $0x450] ss:$12 sps:$4 sm:$0xff]  }
  0xaa   : > { %1523 = vmatprep.subr.bf16.mxu1 %v3178_v60  ;;  %v3210_v60 = vld [vmem:[#allocation7 + $0x348] ss:$12 sps:$4 sm:$0xff]   ;;  %v323_v47 = vld [vmem:[#allocation2 + $0x1e0] sm:$0xff] }
  0xab   : > { %v353_v33 = vld [vmem:[#allocation2 + $0x2d0] sm:$0xff] }
  0xac   : > { %1411 = vmatpush2.bf16.msra.mxu0 %v3180_v61  ;;  %v3619_v61 = vpack.c.bf16 %v306_v51, %v300_v50  ;;  %v3253_v50 = vld [vmem:[#allocation7 + $0xc8] ss:$12 sps:$4 sm:$0xff]  }
  0xad   : > { %1524 = vmatpush2.bf16.msra.mxu1 %v3181_v62  ;;  %1412 = vmatprep.subr.bf16.mxu0 %v3182_v63  ;;  %v3217_v62 = vld [vmem:[#allocation7 + $0x334] ss:$12 sps:$4 sm:$0xff]   ;;  %v3621_v63 = vpack.c.bf16 %v308_v56, %v302_v53  ;;  %v3236_v53 = vld [vmem:[#allocation7 + $0x43c] ss:$12 sps:$4 sm:$0xff]  }
  0xae   : > { %1525 = vmatprep.subr.bf16.mxu1 %v3184_v0  ;;  %v3215_v0 = vld [vmem:[#allocation7 + $0x330] ss:$12 sps:$4 sm:$0xff]   ;;  %v3254_v51 = vld [vmem:[#allocation7 + $0x8] ss:$12 sps:$4 sm:$0xff]  }
  0xaf   : > { %v336_v56 = vld [vmem:[#allocation2 + $0x248] sm:$0xff]  ;;  %v349_v34 = vld [vmem:[#allocation2 + $0x2b0] sm:$0xff] }
  0xb0   : > { %1413 = vmatpush2.bf16.msra.mxu0 %v3186_v1  ;;  %v299_v1 = vld [vmem:[#allocation2 + $0x120] sm:$0xff] }
  0xb1   : > { %1526 = vmatpush2.bf16.msra.mxu1 %v3187_v2  ;;  %1414 = vmatprep.subr.bf16.mxu0 %v3188_v3  ;;  %v305_v2 = vld [vmem:[#allocation2 + $0x150] sm:$0xff] }
  0xb2   : > { %1527 = vmatprep.subr.bf16.mxu1 %v3190_v4  ;;  %v301_v3 = vld [vmem:[#allocation2 + $0x130] sm:$0xff]  ;;  %v307_v4 = vld [vmem:[#allocation2 + $0x160] sm:$0xff]  ;;  %v3627_v13 = vpack.c.bf16 %v305_v2, %v299_v1 }
  0xb3   : > { %v3629_v14 = vpack.c.bf16 %v307_v4, %v301_v3  ;;  %v3234_v2 = vld [vmem:[#allocation7 + $0x438] ss:$12 sps:$4 sm:$0xff]  }
  0xb4   : > { %1415 = vmatpush2.bf16.msra.mxu0 %v3192_v5  ;;  %v3229_v5 = vld [vmem:[#allocation7 + $0x110] ss:$12 sps:$4 sm:$0xff]  }
  0xb5   : > { %1528 = vmatpush2.bf16.msra.mxu1 %v3193_v6  ;;  %1610 = vmatprep.subr.bf16.mxu0 %v3196_v11  ;;  %v3220_v6 = vld [vmem:[#allocation7 + $0x31c] ss:$12 sps:$4 sm:$0xff]   ;;  %v3241_v4 = vld [vmem:[#allocation7 + $0x424] ss:$12 sps:$4 sm:$0xff]  }
  0xb6   : > { %2682 = vmatprep.subr.bf16.mxu1 %v3197_v12  ;;  %v314_v11 = vld [vmem:[#allocation2 + $0x198] sm:$0xff]  ;;  %v320_v12 = vld [vmem:[#allocation2 + $0x1c8] sm:$0xff] }
  0xb7   : > { %1417 = vmatmul.mubr.bf16.vlgmr.msra.gmra.mxu0 %v3591_v16 }
  0xb8   : > { %1530 = vmatmul.mubr.bf16.vlgmr.msra.gmra.mxu1 %v3593_v17  ;;  %1611 = vmatpush1.bf16.msra.mxu0 %v3194_v19  ;;  %v3225_v19 = vld [vmem:[#allocation7 + $0x304] ss:$12 sps:$4 sm:$0xff]  }
  0xb9   : > { %2683 = vmatpush3.bf16.msra.mxu1 %v3198_v20  ;;  %1612 = vmatprep.subr.bf16.mxu0 %v3201_v21  ;;  %v3633_v20 = vpack.c.bf16 %v320_v12, %v314_v11  ;;  %v3223_v21 = vld [vmem:[#allocation7 + $0x300] ss:$12 sps:$4 sm:$0xff]  }
  0xba   : > { %1426 = vmatprep.mubr.bf16.mxu0 %v3595_v22  ;;  %1539 = vmatprep.mubr.bf16.mxu1 %v3597_v24  ;;  %v343_v11 = vld [vmem:[#allocation2 + $0x280] sm:$0xff]  ;;  %v3244_v12 = vld [vmem:[#allocation7 + $0x40c] ss:$12 sps:$4 sm:$0xff]  }
  0xbb   : > { %2684 = vmatprep.subr.bf16.mxu1 %v3205_v29  ;;  %v3245_v29 = vld [vmem:[#allocation7 + $0xe0] ss:$12 sps:$4 sm:$0xff]  }
  0xbc   : > { %1613 = vmatpush1.bf16.msra.mxu0 %v3199_v23  ;;  %v311_v23 = vld [vmem:[#allocation2 + $0x180] sm:$0xff] }
  0xbd   : > { %2685 = vmatpush3.bf16.msra.mxu1 %v3206_v30  ;;  %1614 = vmatprep.subr.bf16.mxu0 %v3204_v31  ;;  %v3228_v30 = vld [vmem:[#allocation7 + $0x46c] ss:$12 sps:$4 sm:$0xff]   ;;  %v3639_v36 = vpack.c.bf16 %v317_v25, %v311_v23 }
  0xbe   : > { %2686 = vmatprep.subr.bf16.mxu1 %v3213_v35  ;;  %v324_v31 = vld [vmem:[#allocation2 + $0x1e8] sm:$0xff] }
  0xbf   : > { %1427 = vmatmul.mubr.bf16.gmra.mxu0 %v3603_v37  ;;  %v3246_v35 = vld [vmem:[#allocation7 + $0x20] ss:$12 sps:$4 sm:$0xff]  }
  0xc0   : > { %1540 = vmatmul.mubr.bf16.gmra.mxu1 %v3605_v38  ;;  %1615 = vmatpush1.bf16.msra.mxu0 %v3202_v39  ;;  %v3641_v39 = vpack.c.bf16 %v319_v27, %v313_v26  ;;  %v356_v23 = vld [vmem:[#allocation2 + $0x2e8] sm:$0xff] }
  0xc1   : > { %1436 = vmatprep.mubr.bf16.mxu0 %v3607_v40  ;;  %1616 = vmatprep.subr.bf16.mxu0 %v3209_v41  ;;  %v3226_v41 = vld [vmem:[#allocation7 + $0x468] ss:$12 sps:$4 sm:$0xff]  }
  0xc2   : > { %1549 = vmatprep.mubr.bf16.mxu1 %v3609_v42  ;;  %2687 = vmatpush3.bf16.msra.mxu1 %v3214_v48  ;;  %v329_v48 = vld [vmem:[#allocation2 + $0x210] sm:$0xff] }
  0xc3   : > { %2688 = vmatprep.subr.bf16.mxu1 %v3221_v52  ;;  %v331_v52 = vld [vmem:[#allocation2 + $0x220] sm:$0xff]  ;;  %v3242_v27 = vld [vmem:[#allocation7 + $0x408] ss:$12 sps:$4 sm:$0xff]  }
  0xc4   : > { %1617 = vmatpush1.bf16.msra.mxu0 %v3207_v43  ;;  %v3643_v43 = vpack.c.bf16 %v330_v32, %v324_v31  ;;  %v3247_v31 = vld [vmem:[#allocation7 + $0x3f0] ss:$12 sps:$4 sm:$0xff]  }
  0xc5   : > { %1618 = vmatprep.subr.bf16.mxu0 %v3212_v49  ;;  %v325_v49 = vld [vmem:[#allocation2 + $0x1f0] sm:$0xff]  ;;  %v347_v32 = vld [vmem:[#allocation2 + $0x2a0] sm:$0xff] }
  0xc6   : > { %2689 = vmatpush3.bf16.msra.mxu1 %v3222_v57  ;;  %v342_v57 = vld [vmem:[#allocation2 + $0x278] sm:$0xff]  ;;  %v3653_v1 = vpack.c.bf16 %v331_v52, %v325_v49  ;;  %v3255_v52 = vld [vmem:[#allocation7 + $0x3c0] ss:$12 sps:$4 sm:$0xff]  }
  0xc7   : > { %1437 = vmatmul.mubr.bf16.gmra.mxu0 %v3615_v58  ;;  %2690 = vmatprep.subr.bf16.mxu1 %v3229_v5  ;;  %v3655_v3 = vpack.c.bf16 %v342_v57, %v336_v56  ;;  %v3250_v49 = vld [vmem:[#allocation7 + $0x3d8] ss:$12 sps:$4 sm:$0xff]   ;;  %v273_v56 = vld [vmem:[#allocation2 + $0x50] sm:$0xff] }
  0xc8   : > { %1550 = vmatmul.mubr.bf16.gmra.mxu1 %v3617_v59  ;;  %1619 = vmatpush1.bf16.msra.mxu0 %v3210_v60  ;;  %v338_v60 = vld [vmem:[#allocation2 + $0x258] sm:$0xff] }
  0xc9   : > { %1446 = vmatprep.mubr.bf16.mxu0 %v3619_v61  ;;  %1620 = vmatprep.subr.bf16.mxu0 %v3217_v62  ;;  %v344_v62 = vld [vmem:[#allocation2 + $0x288] sm:$0xff]  ;;  %v3258_v57 = vld [vmem:[#allocation7 + $0x2f0] ss:$12 sps:$4 sm:$0xff]  }
  0xca   : > { %1559 = vmatprep.mubr.bf16.mxu1 %v3621_v63  ;;  %2691 = vmatpush3.bf16.msra.mxu1 %v3230_v8  ;;  %v3657_v5 = vpack.c.bf16 %v344_v62, %v338_v60  ;;  %v341_v8 = vld [vmem:[#allocation2 + $0x270] sm:$0xff]  ;;  %v280_v60 = vld [vmem:[#allocation2 + $0x88] sm:$0xff]  ;;  %v286_v62 = vld [vmem:[#allocation2 + $0xb8] sm:$0xff] }
  0xcb   : > { %2692 = vmatprep.subr.bf16.mxu1 %v3237_v9  ;;  %v337_v9 = vld [vmem:[#allocation2 + $0x250] sm:$0xff]  ;;  %v3663_v25 = vpack.c.bf16 %v341_v8, %v335_v7  ;;  %v3687_v7 = vpack.c.bf16 %v286_v62, %v280_v60  ;;  %v3262_v8 = vld [vmem:[#allocation7 + $0x2d8] ss:$12 sps:$4 sm:$0xff]  }
  0xcc   : > { %1621 = vmatpush1.bf16.msra.mxu0 %v3215_v0  ;;  %v3651_v0 = vpack.c.bf16 %v329_v48, %v323_v47  ;;  %v3665_v26 = vpack.c.bf16 %v343_v11, %v337_v9  ;;  %v3675_v47 = vpack.c.bf16 %v353_v33, %v347_v32  ;;  %v279_v9 = vld [vmem:[#allocation2 + $0x80] sm:$0xff]  ;;  %v297_v33 = vld [vmem:[#allocation2 + $0x110] sm:$0xff] }
  0xcd   : > { %1622 = vmatprep.subr.bf16.mxu0 %v3220_v6  ;;  %v3239_v6 = vld [vmem:[#allocation7 + $0x420] ss:$12 sps:$4 sm:$0xff]   ;;  %v3263_v11 = vld [vmem:[#allocation7 + $0x218] ss:$12 sps:$4 sm:$0xff]  }
  0xce   : > { %2693 = vmatpush3.bf16.msra.mxu1 %v3238_v28  ;;  %v291_v32 = vld [vmem:[#allocation2 + $0xe0] sm:$0xff]  ;;  %v309_v62 = vld [vmem:[#allocation2 + $0x170] sm:$0xff] }
  0xcf   : > { %1447 = vmatmul.mubr.bf16.gmra.mxu0 %v3627_v13  ;;  %2694 = vmatprep.subr.bf16.mxu1 %v3245_v29  ;;  %v3249_v29 = vld [vmem:[#allocation7 + $0x3f4] ss:$12 sps:$4 sm:$0xff]   ;;  %v3280_v60 = vld [vmem:[#allocation7 + $0x3f8] ss:$12 sps:$4 sm:$0xff]  }
  0xd0   : > { %1560 = vmatmul.mubr.bf16.gmra.mxu1 %v3629_v14  ;;  %1623 = vmatpush1.bf16.msra.mxu0 %v3218_v15  ;;  %v348_v15 = vld [vmem:[#allocation2 + $0x2a8] sm:$0xff] }
  0xd1   : > { %1456 = vmatprep.mubr.bf16.mxu0 %v3631_v18  ;;  %1624 = vmatprep.subr.bf16.mxu0 %v3225_v19  ;;  %v354_v19 = vld [vmem:[#allocation2 + $0x2d8] sm:$0xff] }
  0xd2   : > { %1569 = vmatprep.mubr.bf16.mxu1 %v3633_v20  ;;  %2695 = vmatpush3.bf16.msra.mxu1 %v3246_v35  ;;  %v3667_v28 = vpack.c.bf16 %v354_v19, %v348_v15  ;;  %v355_v35 = vld [vmem:[#allocation2 + $0x2e0] sm:$0xff]  ;;  %v292_v15 = vld [vmem:[#allocation2 + $0xe8] sm:$0xff]  ;;  %v298_v19 = vld [vmem:[#allocation2 + $0x118] sm:$0xff] }
  0xd3   : > { %2696 = vmatprep.subr.bf16.mxu1 %v3253_v50  ;;  %v3677_v48 = vpack.c.bf16 %v355_v35, %v349_v34  ;;  %v3270_v34 = vld [vmem:[#allocation7 + $0x2a8] ss:$12 sps:$4 sm:$0xff]  }
  0xd4   : > { %1625 = vmatpush1.bf16.msra.mxu0 %v3223_v21  ;;  %v350_v21 = vld [vmem:[#allocation2 + $0x2b8] sm:$0xff] }
  0xd5   : > { %1626 = vmatprep.subr.bf16.mxu0 %v3228_v30  ;;  %v3669_v30 = vpack.c.bf16 %v356_v23, %v350_v21  ;;  %v3266_v21 = vld [vmem:[#allocation7 + $0x2c0] ss:$12 sps:$4 sm:$0xff]   ;;  %v3272_v35 = vld [vmem:[#allocation7 + $0x428] ss:$12 sps:$4 sm:$0xff]  }
  0xd6   : > { %2697 = vmatpush3.bf16.msra.mxu1 %v3254_v51  ;;  %v3257_v51 = vld [vmem:[#allocation7 + $0x3c4] ss:$12 sps:$4 sm:$0xff]   ;;  %v3268_v23 = vld [vmem:[#allocation7 + $0x440] ss:$12 sps:$4 sm:$0xff]  }
  0xd7   : > { %1457 = vmatmul.mubr.bf16.gmra.mxu0 %v3639_v36  ;;  %2810 = vmatprep.subr.bf16.mxu1 %v3260_v10  ;;  %v285_v10 = vld [vmem:[#allocation2 + $0xb0] sm:$0xff] }
  0xd8   : > { %1570 = vmatmul.mubr.bf16.gmra.mxu1 %v3641_v39  ;;  %1627 = vmatpush2.bf16.msra.mxu0 %v3226_v41  ;;  %v3252_v41 = vld [vmem:[#allocation7 + $0x3dc] ss:$12 sps:$4 sm:$0xff]  }
  0xd9   : > { %1466 = vmatprep.mubr.bf16.mxu0 %v3643_v43  ;;  %1628 = vmatprep.subr.bf16.mxu0 %v3233_v44  ;;  %v268_v44 = vld [vmem:[#allocation2 + $0x28] sm:$0xff] }
  0xda   : > { %1579 = vmatprep.mubr.bf16.mxu1 %v3645_v45 }
  0xdc   : > { %1629 = vmatpush2.bf16.msra.mxu0 %v3231_v46  ;;  %v274_v46 = vld [vmem:[#allocation2 + $0x58] sm:$0xff] }
  0xdd   : > { %1630 = vmatprep.subr.bf16.mxu0 %v3236_v53  ;;  %v3679_v50 = vpack.c.bf16 %v274_v46, %v268_v44  ;;  %v267_v53 = vld [vmem:[#allocation2 + $0x20] sm:$0xff]  ;;  %v3271_v44 = vld [vmem:[#allocation7 + $0x1e8] ss:$12 sps:$4 sm:$0xff]  }
  0xde   : > { %v3273_v46 = vld [vmem:[#allocation7 + $0x368] ss:$12 sps:$4 sm:$0xff]  }
  0xdf   : > { %1467 = vmatmul.mubr.bf16.gmra.mxu0 %v3651_v0 }
  0xe0   : > { %1580 = vmatmul.mubr.bf16.gmra.mxu1 %v3653_v1  ;;  %1631 = vmatpush2.bf16.msra.mxu0 %v3234_v2  ;;  %v3685_v2 = vpack.c.bf16 %v273_v56, %v267_v53  ;;  %v3277_v56 = vld [vmem:[#allocation7 + $0x350] ss:$12 sps:$4 sm:$0xff]  }
  0xe1   : > { %1476 = vmatprep.mubr.bf16.mxu0 %v3655_v3  ;;  %1632 = vmatprep.subr.bf16.mxu0 %v3241_v4  ;;  %v3259_v4 = vld [vmem:[#allocation7 + $0x230] ss:$12 sps:$4 sm:$0xff]  }
  0xe2   : > { %1589 = vmatprep.mubr.bf16.mxu1 %v3657_v5 }
  0xe4   : > { %1633 = vmatpush2.bf16.msra.mxu0 %v3239_v6  ;;  %v3261_v6 = vld [vmem:[#allocation7 + $0x3b0] ss:$12 sps:$4 sm:$0xff]  }
  0xe5   : > { %1634 = vmatprep.subr.bf16.mxu0 %v3244_v12  ;;  %v3264_v12 = vld [vmem:[#allocation7 + $0x458] ss:$12 sps:$4 sm:$0xff]  }
  0xe7   : > { %1477 = vmatmul.mubr.bf16.gmra.mxu0 %v3663_v25 }
  0xe8   : > { %1590 = vmatmul.mubr.bf16.gmra.mxu1 %v3665_v26  ;;  %1635 = vmatpush2.bf16.msra.mxu0 %v3242_v27  ;;  %v3693_v27 = vpack.c.bf16 %v285_v10, %v279_v9  ;;  %v3281_v9 = vld [vmem:[#allocation7 + $0x338] ss:$12 sps:$4 sm:$0xff]   ;;  %v3282_v10 = vld [vmem:[#allocation7 + $0x260] ss:$12 sps:$4 sm:$0xff]  }
  0xe9   : > { %1486 = vmatprep.mubr.bf16.mxu0 %v3667_v28  ;;  %1636 = vmatprep.subr.bf16.mxu0 %v3249_v29  ;;  %v3695_v29 = vpack.c.bf16 %v298_v19, %v292_v15  ;;  %v3286_v15 = vld [vmem:[#allocation7 + $0x248] ss:$12 sps:$4 sm:$0xff]  }
  0xea   : > { %1599 = vmatprep.mubr.bf16.mxu1 %v3669_v30  ;;  %v3288_v19 = vld [vmem:[#allocation7 + $0x3c8] ss:$12 sps:$4 sm:$0xff]  }
  0xec   : > { %1637 = vmatpush2.bf16.msra.mxu0 %v3247_v31  ;;  %v3269_v31 = vld [vmem:[#allocation7 + $0x380] ss:$12 sps:$4 sm:$0xff]  }
  0xed   : > { %1638 = vmatprep.subr.bf16.mxu0 %v3252_v41  ;;  %v310_v41 = vld [vmem:[#allocation2 + $0x178] sm:$0xff] }
  0xef   : > { %1487 = vmatmul.mubr.bf16.gmra.mxu0 %v3675_v47 }
  0xf0   : > { %1600 = vmatmul.mubr.bf16.gmra.mxu1 %v3677_v48  ;;  %1639 = vmatpush2.bf16.msra.mxu0 %v3250_v49  ;;  %v3274_v49 = vld [vmem:[#allocation7 + $0x290] ss:$12 sps:$4 sm:$0xff]  }
  0xf1   : > { %1642 = vmatprep.mubr.bf16.mxu0 %v3679_v50  ;;  %1640 = vmatprep.subr.bf16.mxu0 %v3257_v51  ;;  %v3276_v51 = vld [vmem:[#allocation7 + $0x410] ss:$12 sps:$4 sm:$0xff]  }
  0xf2   : > { %1755 = vmatprep.mubr.bf16.mxu1 %v3585_v54  ;;  %v3265_v54 = vld [vmem:[#allocation7 + $0x398] ss:$12 sps:$4 sm:$0xff]  }
  0xf4   : > { %1641 = vmatpush2.bf16.msra.mxu0 %v3255_v52  ;;  %v3701_v52 = vpack.c.bf16 %v297_v33, %v291_v32  ;;  %v3287_v32 = vld [vmem:[#allocation7 + $0x188] ss:$12 sps:$4 sm:$0xff]  }
  0xf5   : > { %2746 = vmatprep.subr.bf16.mxu0 %v3258_v57  ;;  %v3278_v57 = vld [vmem:[#allocation7 + $0x278] ss:$12 sps:$4 sm:$0xff]   ;;  %v3289_v33 = vld [vmem:[#allocation7 + $0x308] ss:$12 sps:$4 sm:$0xff]  }
  0xf7   : > { %1643 = vmatmul.mubr.bf16.vlgmr.msra.gmra.mxu0 %v3685_v2 }
  0xf8   : > { %1756 = vmatmul.mubr.bf16.vlgmr.msra.gmra.mxu1 %v3591_v16  ;;  %2747 = vmatpush3.bf16.msra.mxu0 %v3259_v4  ;;  %v3267_v16 = vld [vmem:[#allocation7 + $0x200] ss:$12 sps:$4 sm:$0xff]  }
  0xf9   : > { %2811 = vmatpush3.bf16.msra.mxu1 %v3261_v6  ;;  %1652 = vmatprep.mubr.bf16.mxu0 %v3687_v7  ;;  %v316_v4 = vld [vmem:[#allocation2 + $0x1a8] sm:$0xff]  ;;  %v322_v6 = vld [vmem:[#allocation2 + $0x1d8] sm:$0xff] }
  0xfa   : > { %1763 = vmatprep.mubr.bf16.mxu1 %v3595_v22  ;;  %2748 = vmatprep.subr.bf16.mxu0 %v3262_v8  ;;  %v304_v22 = vld [vmem:[#allocation2 + $0x148] sm:$0xff] }
  0xfb   : > { %2812 = vmatprep.subr.bf16.mxu1 %v3264_v12  ;;  %v3703_v53 = vpack.c.bf16 %v310_v41, %v304_v22  ;;  %v3279_v8 = vld [vmem:[#allocation7 + $0x1b8] ss:$12 sps:$4 sm:$0xff]  }
  0xfc   : > { %2749 = vmatpush3.bf16.msra.mxu0 %v3263_v11  ;;  %v3284_v11 = vld [vmem:[#allocation7 + $0x3e0] ss:$12 sps:$4 sm:$0xff]   ;;  %v346_v41 = vld [vmem:[#allocation2 + $0x298] sm:$0xff] }
  0xfd   : > { %2813 = vmatpush3.bf16.msra.mxu1 %v3265_v54  ;;  %2750 = vmatprep.subr.bf16.mxu0 %v3266_v21  ;;  %v3711_v54 = vpack.c.bf16 %v322_v6, %v316_v4  ;;  %v315_v21 = vld [vmem:[#allocation2 + $0x1a0] sm:$0xff]  ;;  %v340_v22 = vld [vmem:[#allocation2 + $0x268] sm:$0xff]  ;;  %v2076_v4 = vld [vmem:[#allocation11 + $0x70] sm:$0xff] }
  0xfe   : > { %2814 = vmatprep.subr.bf16.mxu1 %v3268_v23  ;;  %v321_v23 = vld [vmem:[#allocation2 + $0x1d0] sm:$0xff]  ;;  %v3754_v6 = vld [vmem:[#allocation9] sm:$0x7] }
  0xff   : > { %1653 = vmatmul.mubr.bf16.gmra.mxu0 %v3693_v27 }
 0x100   : > { %1764 = vmatmul.mubr.bf16.gmra.mxu1 %v3603_v37  ;;  %1662 = vmatprep.mubr.bf16.mxu0 %v3695_v29  ;;  %v3275_v37 = vld [vmem:[#allocation7 + $0x1d0] ss:$12 sps:$4 sm:$0xff]  }
 0x101   : > { %1771 = vmatprep.mubr.bf16.mxu1 %v3607_v40  ;;  %2751 = vmatpush3.bf16.msra.mxu0 %v3267_v16  ;;  %v303_v40 = vld [vmem:[#allocation2 + $0x140] sm:$0xff]  ;;  %v328_v16 = vld [vmem:[#allocation2 + $0x208] sm:$0xff] }
 0x102   : > { %2815 = vmatpush3.bf16.msra.mxu1 %v3269_v31  ;;  %2752 = vmatprep.subr.bf16.mxu0 %v3270_v34  ;;  %v3709_v12 = vpack.c.bf16 %v309_v62, %v303_v40  ;;  %v334_v31 = vld [vmem:[#allocation2 + $0x238] sm:$0xff]  ;;  %v3717_v34 = vpack.c.bf16 %v321_v23, %v315_v21  ;;  %v601_v40 = vlaneseq  ;;  %v2078_v23 = vld [vmem:[#allocation11 + $0x80] sm:$0xff] }
 0x103   : > { %2816 = vmatprep.subr.bf16.mxu1 %v3272_v35  ;;  %v3719_v35 = vpack.c.bf16 %v334_v31, %v328_v16  ;;  %v2065_v21 = vld [vmem:[#allocation11 + $0x18] sm:$0xff]  ;;  %v2062_v16 = vld [vmem:[#allocation11] sm:$0xff] }
 0x104   : > { %v3747_v62 = vshrl.u32 %v601_v40, 7  ;;  %v2105_v31 = vld [vmem:[#allocation11 + $0x158] sm:$0xff] }
 0x105   : > { %2753 = vmatpush3.bf16.msra.mxu0 %v3271_v44 }
 0x106   : > { %2817 = vmatpush3.bf16.msra.mxu1 %v3273_v46  ;;  %2754 = vmatprep.subr.bf16.mxu0 %v3274_v49  ;;  %v3727_v46 = vpack.c.bf16 %v346_v41, %v340_v22  ;;  %v2093_v49 = vld [vmem:[#allocation11 + $0xf8] sm:$0xff]  ;;  %v2099_v22 = vld [vmem:[#allocation11 + $0x128] sm:$0xff] }
 0x107   : > { %2818 = vmatprep.subr.bf16.mxu1 %v3276_v51  ;;  %1663 = vmatmul.mubr.bf16.gmra.mxu0 %v3701_v52  ;;  %v345_v51 = vld [vmem:[#allocation2 + $0x290] sm:$0xff] }
 0x108   : > { %1772 = vmatmul.mubr.bf16.gmra.mxu1 %v3615_v58  ;;  %1672 = vmatprep.mubr.bf16.mxu0 %v3703_v53  ;;  %v3283_v58 = vld [vmem:[#allocation7 + $0x1a0] ss:$12 sps:$4 sm:$0xff]  }
 0x109   : > { %1779 = vmatprep.mubr.bf16.mxu1 %v3619_v61  ;;  %2755 = vmatpush3.bf16.msra.mxu0 %v3275_v37  ;;  %v3285_v61 = vld [vmem:[#allocation7 + $0x320] ss:$12 sps:$4 sm:$0xff]   ;;  %v358_v37 = vld [vmem:[#allocation2 + $0x2f8] sm:$0xff] }
 0x10a   : > { %2819 = vmatpush3.bf16.msra.mxu1 %v3277_v56  ;;  %2756 = vmatprep.subr.bf16.mxu0 %v3278_v57 }
 0x10b   : > { %2820 = vmatprep.subr.bf16.mxu1 %v3280_v60  ;;  %v357_v60 = vld [vmem:[#allocation2 + $0x2f0] sm:$0xff] }
 0x10d   : > { %2757 = vmatpush3.bf16.msra.mxu0 %v3279_v8 }
 0x10e   : > { %2821 = vmatpush3.bf16.msra.mxu1 %v3281_v9  ;;  %2758 = vmatprep.subr.bf16.mxu0 %v3282_v10  ;;  %v2088_v9 = vld [vmem:[#allocation11 + $0xd0] sm:$0xff] }
 0x10f   : > { %2822 = vmatprep.subr.bf16.mxu1 %v3284_v11  ;;  %1673 = vmatmul.mubr.bf16.gmra.mxu0 %v3709_v12  ;;  %v2072_v10 = vld [vmem:[#allocation11 + $0x50] sm:$0xff]  ;;  %v2087_v11 = vld [vmem:[#allocation11 + $0xc8] sm:$0xff] }
 0x110   : > { %1780 = vmatmul.mubr.bf16.gmra.mxu1 %v3627_v13  ;;  %1682 = vmatprep.mubr.bf16.mxu0 %v3711_v54  ;;  %v327_v13 = vld [vmem:[#allocation2 + $0x200] sm:$0xff] }
 0x111   : > { %1787 = vmatprep.mubr.bf16.mxu1 %v3631_v18  ;;  %2759 = vmatpush3.bf16.msra.mxu0 %v3283_v58  ;;  %v333_v18 = vld [vmem:[#allocation2 + $0x230] sm:$0xff] }
 0x112   : > { %2823 = vmatpush3.bf16.msra.mxu1 %v3285_v61  ;;  %2760 = vmatprep.subr.bf16.mxu0 %v3286_v15  ;;  %v3725_v44 = vpack.c.bf16 %v333_v18, %v327_v13  ;;  %v2071_v58 = vld [vmem:[#allocation11 + $0x48] sm:$0xff]  ;;  %v2084_v61 = vld [vmem:[#allocation11 + $0xb0] sm:$0xff] }
 0x113   : > { %2824 = vmatprep.subr.bf16.mxu1 %v3288_v19  ;;  %v2068_v15 = vld [vmem:[#allocation11 + $0x30] sm:$0xff]  ;;  %v2081_v19 = vld [vmem:[#allocation11 + $0x98] sm:$0xff] }
 0x114   : > { %v2100_v13 = vld [vmem:[#allocation11 + $0x130] sm:$0xff] }
 0x115   : > { %2761 = vmatpush3.bf16.msra.mxu0 %v3287_v32  ;;  %v2103_v32 = vld [vmem:[#allocation11 + $0x148] sm:$0xff] }
 0x116   : > { %2825 = vmatpush3.bf16.msra.mxu1 %v3289_v33  ;;  %2874 = vmatprep.subr.mxu0 %v2093_v49  ;;  %v2101_v33 = vld [vmem:[#allocation11 + $0x138] sm:$0xff] }
 0x117   : > { %1683 = vmatmul.mubr.bf16.gmra.mxu0 %v3717_v34 }
 0x118   : > { %1788 = vmatmul.mubr.bf16.gmra.mxu1 %v3639_v36  ;;  %1692 = vmatprep.mubr.bf16.mxu0 %v3719_v35  ;;  %v339_v36 = vld [vmem:[#allocation2 + $0x260] sm:$0xff] }
 0x119   : > { %1795 = vmatprep.mubr.bf16.mxu1 %v3643_v43  ;;  %v352_v43 = vld [vmem:[#allocation2 + $0x2c8] sm:$0xff]  ;;  %v3733_v56 = vpack.c.bf16 %v345_v51, %v339_v36  ;;  %v2097_v51 = vld [vmem:[#allocation11 + $0x118] sm:$0xff] }
 0x11a   : > { %v3735_v57 = vpack.c.bf16 %v358_v37, %v352_v43 }
 0x11f   : > { %1693 = vmatmul.mubr.bf16.gmra.mxu0 %v3725_v44 }
 0x120   : > { %1796 = vmatmul.mubr.bf16.gmra.mxu1 %v3651_v0  ;;  %1702 = vmatprep.mubr.bf16.mxu0 %v3727_v46  ;;  %v351_v0 = vld [vmem:[#allocation2 + $0x2c0] sm:$0xff] }
 0x121   : > { %1803 = vmatprep.mubr.bf16.mxu1 %v3655_v3  ;;  %v3741_v3 = vpack.c.bf16 %v357_v60, %v351_v0  ;;  %v2095_v60 = vld [vmem:[#allocation11 + $0x108] sm:$0xff] }
 0x127   : > { %1703 = vmatmul.mubr.bf16.gmra.mxu0 %v3733_v56 }
 0x128   : > { %1804 = vmatmul.mubr.bf16.gmra.mxu1 %v3663_v25  ;;  %1712 = vmatprep.mubr.bf16.mxu0 %v3735_v57  ;;  %v2077_v25 = vld [vmem:[#allocation11 + $0x78] sm:$0xff] }
 0x129   : > { %1811 = vmatprep.mubr.bf16.mxu1 %v3667_v28  ;;  %v2092_v28 = vld [vmem:[#allocation11 + $0xf0] sm:$0xff] }
 0x12f   : > { %1713 = vmatmul.mubr.bf16.gmra.mxu0 %v3741_v3 }
 0x130   : > { %1812 = vmatmul.mubr.bf16.gmra.mxu1 %v3675_v47  ;;  %1852 = vmatprep.mubr.bf16.mxu0 %v3587_v55  ;;  %v611_v47 = vsub.s32 2, %v3747_v62  ;;  %v2091_v55 = vld [vmem:[#allocation11 + $0xe8] sm:$0xff] }
 0x131   : > { %1949 = vmatprep.mubr.bf16.mxu1 %v3679_v50  ;;  %v2075_v50 = vld [vmem:[#allocation11 + $0x68] sm:$0xff] }
 0x132   : > { %v3757_v8 = vrot.slane %v3754_v6, %v611_v47 }
 0x134   : > { %4176 = vst [vmem:[#allocation17_spill] sm:$0xff] %v3757_v8 }
 0x137   : > { %1853 = vmatmul.mubr.bf16.vlgmr.msra.gmra.mxu0 %v3593_v17  ;;  %v2090_v17 = vld [vmem:[#allocation11 + $0xe0] sm:$0xff] }
 0x138   : > { %1950 = vmatmul.mubr.bf16.vlgmr.msra.gmra.mxu1 %v3685_v2  ;;  %1860 = vmatprep.mubr.bf16.mxu0 %v3597_v24  ;;  %v2074_v24 = vld [vmem:[#allocation11 + $0x60] sm:$0xff]  ;;  %v2089_v2 = vld [vmem:[#allocation11 + $0xd8] sm:$0xff] }
 0x139   : > { %1957 = vmatprep.mubr.bf16.mxu1 %v3687_v7  ;;  %2875 = vmatpush3.msra.mxu0 %v2077_v25  ;;  %v2073_v7 = vld [vmem:[#allocation11 + $0x58] sm:$0xff]  ;;  %v2094_v25 = vld [vmem:[#allocation11 + $0x100] sm:$0xff] }
 0x13a   : > { %2876 = vmatprep.subr.mxu0 %v2092_v28 }
 0x13b   : > { %2877 = vmatpush3.msra.mxu0 %v2076_v4 }
 0x13c   : > { %2878 = vmatprep.subr.mxu0 %v2091_v55 }
 0x13d   : > { %2879 = vmatpush3.msra.mxu0 %v2075_v50  ;;  %v3441_v50 = vmov 0  }
 0x13e   : > { %2880 = vmatprep.subr.mxu0 %v2090_v17  ;;  %3097 = vset.pattern.permute.xlu0 %v3441_v50  ;;  %v2678_v17 = vld [vmem:[#allocation6] ss:$0 sm:$0xff] }
 0x13f   : > { %1861 = vmatmul.mubr.bf16.gmra.mxu0 %v3605_v38  ;;  %v2086_v38 = vld [vmem:[#allocation11 + $0xc0] sm:$0xff]  ;;  %2117 = vperm.xlu0 %3097, %v2678_v17  }
 0x140   : > { %1958 = vmatmul.mubr.bf16.gmra.mxu1 %v3693_v27  ;;  %1868 = vmatprep.mubr.bf16.mxu0 %v3609_v42  ;;  %v2070_v42 = vld [vmem:[#allocation11 + $0x40] sm:$0xff]  ;;  %v2085_v27 = vld [vmem:[#allocation11 + $0xb8] sm:$0xff] }
 0x141   : > { %1965 = vmatprep.mubr.bf16.mxu1 %v3695_v29  ;;  %2881 = vmatpush3.msra.mxu0 %v2074_v24  ;;  %v2069_v29 = vld [vmem:[#allocation11 + $0x38] sm:$0xff] }
 0x142   : > { %2882 = vmatprep.subr.mxu0 %v2089_v2 }
 0x143   : > { %2883 = vmatpush3.msra.mxu0 %v2073_v7 }
 0x144   : > { %2884 = vmatprep.subr.mxu0 %v2088_v9 }
 0x145   : > { %2885 = vmatpush3.msra.mxu0 %v2072_v10 }
 0x146   : > { %2886 = vmatprep.subr.mxu0 %v2087_v11 }
 0x147   : > { %1869 = vmatmul.mubr.bf16.gmra.mxu0 %v3617_v59  ;;  %v2083_v59 = vld [vmem:[#allocation11 + $0xa8] sm:$0xff] }
 0x148   : > { %1966 = vmatmul.mubr.bf16.gmra.mxu1 %v3701_v52  ;;  %1876 = vmatprep.mubr.bf16.mxu0 %v3621_v63  ;;  %v2067_v63 = vld [vmem:[#allocation11 + $0x28] sm:$0xff]  ;;  %v2082_v52 = vld [vmem:[#allocation11 + $0xa0] sm:$0xff] }
 0x149   : > { %1973 = vmatprep.mubr.bf16.mxu1 %v3703_v53  ;;  %2887 = vmatpush3.msra.mxu0 %v2071_v58  ;;  %v2066_v53 = vld [vmem:[#allocation11 + $0x20] sm:$0xff] }
 0x14a   : > { %2888 = vmatprep.subr.mxu0 %v2086_v38 }
 0x14b   : > { %2889 = vmatpush3.msra.mxu0 %v2070_v42 }
 0x14c   : > { %2890 = vmatprep.subr.mxu0 %v2085_v27 }
 0x14d   : > { %2891 = vmatpush3.msra.mxu0 %v2069_v29 }
 0x14e   : > { %2892 = vmatprep.subr.mxu0 %v2084_v61 }
 0x14f   : > { %1877 = vmatmul.mubr.bf16.gmra.mxu0 %v3629_v14  ;;  %v2080_v14 = vld [vmem:[#allocation11 + $0x90] sm:$0xff] }
 0x150   : > { %1974 = vmatmul.mubr.bf16.gmra.mxu1 %v3709_v12  ;;  %1884 = vmatprep.mubr.bf16.mxu0 %v3633_v20  ;;  %v2064_v20 = vld [vmem:[#allocation11 + $0x10] sm:$0xff]  ;;  %v2079_v12 = vld [vmem:[#allocation11 + $0x88] sm:$0xff] }
 0x151   : > { %1981 = vmatprep.mubr.bf16.mxu1 %v3711_v54  ;;  %2893 = vmatpush3.msra.mxu0 %v2068_v15  ;;  %v2063_v54 = vld [vmem:[#allocation11 + $0x8] sm:$0xff] }
 0x152   : > { %2894 = vmatprep.subr.mxu0 %v2083_v59 }
 0x153   : > { %2895 = vmatpush3.msra.mxu0 %v2067_v63 }
 0x154   : > { %2896 = vmatprep.subr.mxu0 %v2082_v52 }
 0x155   : > { %2897 = vmatpush3.msra.mxu0 %v2066_v53 }
 0x156   : > { %2898 = vmatprep.subr.mxu0 %v2081_v19 }
 0x157   : > { %1885 = vmatmul.mubr.bf16.gmra.mxu0 %v3641_v39  ;;  %v2109_v39 = vld [vmem:[#allocation11 + $0x178] sm:$0xff] }
 0x158   : > { %1982 = vmatmul.mubr.bf16.gmra.mxu1 %v3717_v34  ;;  %1892 = vmatprep.mubr.bf16.mxu0 %v3645_v45  ;;  %v2108_v45 = vld [vmem:[#allocation11 + $0x170] sm:$0xff] }
 0x159   : > { %1989 = vmatprep.mubr.bf16.mxu1 %v3719_v35  ;;  %2899 = vmatpush3.msra.mxu0 %v2065_v21 }
 0x15a   : > { %2900 = vmatprep.subr.mxu0 %v2080_v14  ;;  %2986 = vmatprep.subr.mxu1 %v2109_v39 }
 0x15b   : > { %2901 = vmatpush3.msra.mxu0 %v2064_v20  ;;  %2987 = vmatpush3.msra.mxu1 %v2109_v39 }
 0x15c   : > { %2902 = vmatprep.subr.mxu0 %v2079_v12  ;;  %2988 = vmatprep.subr.mxu1 %v2108_v45 }
 0x15d   : > { %2903 = vmatpush3.msra.mxu0 %v2063_v54  ;;  %2989 = vmatpush3.msra.mxu1 %v2108_v45 }
 0x15e   : > { %2904 = vmatprep.subr.mxu0 %v2078_v23 }
 0x15f   : > { %1893 = vmatmul.mubr.bf16.gmra.mxu0 %v3653_v1  ;;  %v2107_v1 = vld [vmem:[#allocation11 + $0x168] sm:$0xff] }
 0x160   : > { %1990 = vmatmul.mubr.bf16.gmra.mxu1 %v3725_v44  ;;  %1900 = vmatprep.mubr.bf16.mxu0 %v3657_v5  ;;  %v2106_v5 = vld [vmem:[#allocation11 + $0x160] sm:$0xff] }
 0x161   : > { %1997 = vmatprep.mubr.bf16.mxu1 %v3727_v46  ;;  %2905 = vmatpush3.msra.mxu0 %v2062_v16  ;;  %v2098_v46 = vld [vmem:[#allocation11 + $0x120] sm:$0xff] }
 0x162   : > { %2990 = vmatprep.subr.mxu1 %v2107_v1 }
 0x163   : > { %2991 = vmatpush3.msra.mxu1 %v2107_v1 }
 0x164   : > { %2992 = vmatprep.subr.mxu1 %v2106_v5 }
 0x165   : > { %2993 = vmatpush3.msra.mxu1 %v2106_v5 }
 0x166   : > { %2994 = vmatprep.subr.mxu1 %v2105_v31 }
 0x167   : > { %1901 = vmatmul.mubr.bf16.gmra.mxu0 %v3665_v26  ;;  %v2104_v26 = vld [vmem:[#allocation11 + $0x150] sm:$0xff]  ;;  %2995 = vmatpush3.msra.mxu1 %v2105_v31 }
 0x168   : > { %1998 = vmatmul.mubr.bf16.gmra.mxu1 %v3733_v56  ;;  %1908 = vmatprep.mubr.bf16.mxu0 %v3669_v30  ;;  %v2102_v30 = vld [vmem:[#allocation11 + $0x140] sm:$0xff]  ;;  %v2096_v56 = vld [vmem:[#allocation11 + $0x110] sm:$0xff] }
 0x169   : > { %2005 = vmatprep.mubr.bf16.mxu1 %v3735_v57  ;;  %2996 = vmatprep.subr.mxu1 %v2104_v26 }
 0x16a   : > { %2997 = vmatpush3.msra.mxu1 %v2104_v26 }
 0x16b   : > { %2998 = vmatprep.subr.mxu1 %v2103_v32 }
 0x16c   : > { %2999 = vmatpush3.msra.mxu1 %v2103_v32 }
 0x16d   : > { %3000 = vmatprep.subr.mxu1 %v2102_v30 }
 0x16e   : > { %3001 = vmatpush3.msra.mxu1 %v2102_v30 }
 0x16f   : > { %1909 = vmatmul.mubr.bf16.gmra.mxu0 %v3677_v48  ;;  %3002 = vmatprep.subr.mxu1 %v2101_v33 }
 0x170   : > { %2006 = vmatmul.mubr.bf16.gmra.mxu1 %v3741_v3 }
 0x171   : > { %3003 = vmatpush3.msra.mxu1 %v2101_v33 }
 0x172   : > { %3004 = vmatprep.subr.mxu1 %v2100_v13 }
 0x173   : > { %3005 = vmatpush3.msra.mxu1 %v2100_v13  ;;  %v603_v13 = vsub.s32 0, %v3747_v62 }
 0x174   : > { %3006 = vmatprep.subr.mxu1 %v2099_v22 }
 0x175   : > { %3007 = vmatpush3.msra.mxu1 %v2099_v22 }
 0x176   : > { %3008 = vmatprep.subr.mxu1 %v2098_v46 }
 0x177   : > { %v3785_v34 = vpop.f32.mrf.mxu0  ;;  %3009 = vmatpush3.msra.mxu1 %v2098_v46 }
 0x178   : > { %v3787_v35 = vpop.f32.mrf.mxu1  ;;  %3010 = vmatprep.subr.mxu1 %v2097_v51 }
 0x179   : > { %v3789_v48 = vpop.f32.mrf.mxu0  ;;  %3011 = vmatpush3.msra.mxu1 %v2097_v51  ;;  %v607_v51 = vsub.s32 1, %v3747_v62 }
 0x17a   : > { %v3791_v18 = vpop.f32.mrf.mxu1  ;;  %3012 = vmatprep.subr.mxu1 %v2096_v56 }
 0x17b   : > { %v3793_v41 = vpop.f32.mrf.mxu0  ;;  %3013 = vmatpush3.msra.mxu1 %v2096_v56  ;;  %v3907_v8 = vrot.slane %v3754_v6, %v607_v51 }
 0x17c   : > { %v3795_v44 = vpop.f32.mrf.mxu1  ;;  %3014 = vmatprep.subr.mxu1 %v2095_v60 }
 0x17d   : > { %v3797_v49 = vpop.f32.mrf.mxu0  ;;  %3015 = vmatpush3.msra.mxu1 %v2095_v60 }
 0x17e   : > { %v3799_v36 = vpop.f32.mrf.mxu1  ;;  %3016 = vmatprep.subr.mxu1 %v2094_v25 }
 0x17f   : > { %v3801_v43 = vpop.f32.mrf.mxu0  ;;  %3017 = vmatpush3.msra.mxu1 %v2094_v25  ;;  %v3900_v25 = vrot.slane %v3754_v6, %v603_v13  ;;  %v1421_v13 = vadd.f32 %v3789_v48, %v3907_v8 }
 0x180   : > { %v3803_v37 = vpop.f32.mrf.mxu1 }
 0x181   : > { %v3805_v57 = vpop.f32.mrf.mxu0  ;;  %v1419_v62 = vadd.f32 %v3785_v34, %v3900_v25  ;;  %v1423_v51 = vadd.f32 %v3793_v41, %v3900_v25  ;;  %v1534_v34 = vadd.f32 %v3791_v18, %v1421_v13 }
 0x182   : > { %v3807_v0 = vpop.f32.mrf.mxu1  ;;  %v1431_v18 = vadd.f32 %v3805_v57, %v3907_v8 }
 0x183   : > { %v3809_v3 = vpop.f32.mrf.mxu0  ;;  %v1532_v6 = vadd.f32 %v3787_v35, %v1419_v62  ;;  %v1429_v35 = vadd.f32 %v3801_v43, %v3900_v25 }
 0x184   : > { %v3811_v40 = vpop.f32.mrf.mxu1  ;;  %v1433_v43 = vadd.f32 %v3809_v3, %v3900_v25 }
 0x185   : > { %v3813_v28 = vpop.f32.mrf.mxu0 }
 0x186   : > { %v3815_v4 = vpop.f32.mrf.mxu1  ;;  %v1435_v57 = vadd.f32 %v3813_v28, %v3907_v8 }
 0x187   : > { %v3817_v47 = vpop.f32.mrf.mxu0 }
 0x188   : > { %v3819_v55 = vpop.f32.mrf.mxu1  ;;  %v1439_v3 = vadd.f32 %v3817_v47, %v3900_v25 }
 0x189   : > { %v3821_v24 = vpop.f32.mrf.mxu0 }
 0x18a   : > { %v3823_v2 = vpop.f32.mrf.mxu1  ;;  %v1441_v28 = vadd.f32 %v3821_v24, %v3907_v8 }
 0x18b   : > { %v3825_v7 = vpop.f32.mrf.mxu0 }
 0x18c   : > { %v3827_v9 = vpop.f32.mrf.mxu1  ;;  %v1443_v47 = vadd.f32 %v3825_v7, %v3900_v25 }
 0x18d   : > { %v3829_v10 = vpop.f32.mrf.mxu0 }
 0x18e   : > { %v3831_v11 = vpop.f32.mrf.mxu1  ;;  %v1445_v24 = vadd.f32 %v3829_v10, %v3907_v8 }
 0x18f   : > { %v3833_v58 = vpop.f32.mrf.mxu0 }
 0x190   : > { %v3835_v38 = vpop.f32.mrf.mxu1  ;;  %v1449_v7 = vadd.f32 %v3833_v58, %v3900_v25 }
 0x191   : > { %v3837_v42 = vpop.f32.mrf.mxu0 }
 0x192   : > { %v3839_v27 = vpop.f32.mrf.mxu1  ;;  %v1451_v10 = vadd.f32 %v3837_v42, %v3907_v8 }
 0x193   : > { %v3841_v29 = vpop.f32.mrf.mxu0 }
 0x194   : > { %v3843_v61 = vpop.f32.mrf.mxu1  ;;  %v1453_v58 = vadd.f32 %v3841_v29, %v3900_v25 }
 0x195   : > { %v3845_v15 = vpop.f32.mrf.mxu0 }
 0x196   : > { %v3847_v59 = vpop.f32.mrf.mxu1  ;;  %v1455_v42 = vadd.f32 %v3845_v15, %v3907_v8 }
 0x197   : > { %v3849_v63 = vpop.f32.mrf.mxu0 }
 0x198   : > { %v3851_v52 = vpop.f32.mrf.mxu1  ;;  %v1459_v29 = vadd.f32 %v3849_v63, %v3900_v25 }
 0x199   : > { %v3853_v53 = vpop.f32.mrf.mxu0 }
 0x19a   : > { %v3855_v19 = vpop.f32.mrf.mxu1  ;;  %v1461_v15 = vadd.f32 %v3853_v53, %v3907_v8 }
 0x19b   : > { %v3857_v21 = vpop.f32.mrf.mxu0 }
 0x19c   : > { %v3859_v14 = vpop.f32.mrf.mxu1  ;;  %v1463_v63 = vadd.f32 %v3857_v21, %v3900_v25 }
 0x19d   : > { %v3861_v20 = vpop.f32.mrf.mxu0 }
 0x19e   : > { %v3863_v12 = vpop.f32.mrf.mxu1  ;;  %v1465_v53 = vadd.f32 %v3861_v20, %v3907_v8 }
 0x19f   : > { %v3865_v54 = vpop.f32.mrf.mxu0 }
 0x1a0   : > { %v3867_v23 = vpop.f32.mrf.mxu1  ;;  %v1469_v21 = vadd.f32 %v3865_v54, %v3900_v25 }
 0x1a1   : > { %v3869_v16 = vpop.f32.mrf.mxu0 }
 0x1a2   : > { %v3871_v39 = vpop.f32.mrf.mxu1  ;;  %v1471_v20 = vadd.f32 %v3869_v16, %v3907_v8 }
 0x1a3   : > { %v3873_v45 = vpop.f32.mrf.mxu0 }
 0x1a4   : > { %v3875_v1 = vpop.f32.mrf.mxu1  ;;  %v1473_v54 = vadd.f32 %v3873_v45, %v3900_v25 }
 0x1a5   : > { %v3877_v5 = vpop.f32.mrf.mxu0 }
 0x1a6   : > { %v3879_v31 = vpop.f32.mrf.mxu1  ;;  %v1475_v16 = vadd.f32 %v3877_v5, %v3907_v8 }
 0x1a7   : > { %v3881_v26 = vpop.f32.mrf.mxu0 }
 0x1a8   : > { %v3883_v32 = vpop.f32.mrf.mxu1  ;;  %v1479_v45 = vadd.f32 %v3881_v26, %v3900_v25 }
 0x1a9   : > { %4177 = vst [vmem:[#allocation18_spill] sm:$0xff] %v3883_v32  ;;  %v3885_v30 = vpop.f32.mrf.mxu0 }
 0x1aa   : > { %v3887_v33 = vpop.f32.mrf.mxu1  ;;  %v1481_v5 = vadd.f32 %v3885_v30, %v3907_v8 }
 0x1ab   : > { %4178 = vst [vmem:[#allocation19_spill] sm:$0xff] %v3887_v33  ;;  %v3890_v22 = vpop.f32.mrf.mxu0 }
 0x1ac   : > { %4179 = vst [vmem:[#allocation20_spill] sm:$0xff] %v3890_v22  ;;  %v3892_v46 = vpop.f32.mrf.mxu1 }
 0x1ad   : > { %4180 = vst [vmem:[#allocation21_spill] sm:$0xff] %v3892_v46  ;;  %v3895_v56 = vpop.f32.mrf.mxu0 }
 0x1ae   : > { %4181 = vst [vmem:[#allocation22_spill] sm:$0xff] %v3895_v56  ;;  %v3897_v60 = vpop.f32.mrf.mxu1 }
 0x1af   : > { %4182 = vst [vmem:[#allocation23_spill] sm:$0xff] %v3897_v60  ;;  %v3902_v50 = vpop.f32.mrf.mxu0 }
 0x1b0   : > { %4183 = vst [vmem:[#allocation24_spill] sm:$0xff] %v3902_v50  ;;  %v3904_v17 = vpop.f32.mrf.mxu1 }
 0x1b1   : > { %4184 = vst [vmem:[#allocation25_spill] sm:$0xff] %v3904_v17  ;;  %v3909_v33 = vpop.f32.mrf.mxu0 }
 0x1b2   : > { %4185 = vst [vmem:[#allocation26_spill] sm:$0xff] %v3909_v33  ;;  %v3911_v22 = vpop.f32.mrf.mxu1 }
 0x1b3   : > { %4186 = vst [vmem:[#allocation27_spill] sm:$0xff] %v3911_v22  ;;  %v3915_v46 = vpop.f32.mrf.mxu0  ;;  %v4193_v26 = vld [vmem:[#allocation20_spill] sm:$0xff] }
 0x1b4   : > { %4187 = vst [vmem:[#allocation28_spill] sm:$0xff] %v3915_v46  ;;  %v3917_v60 = vpop.f32.mrf.mxu1 }
 0x1b5   : > { %4188 = vst [vmem:[#allocation29_spill] sm:$0xff] %v3917_v60  ;;  %v3921_v50 = vpop.f32.mrf.mxu0  ;;  %v1425_v60 = vadd.f32 %v3797_v49, %v3907_v8  ;;  %v4195_v30 = vld [vmem:[#allocation22_spill] sm:$0xff] }
 0x1b6   : > { %4189 = vst [vmem:[#allocation30_spill] sm:$0xff] %v3921_v50  ;;  %v3923_v17 = vpop.f32.mrf.mxu1 }
 0x1b7   : > { %4190 = vst [vmem:[#allocation31_spill] sm:$0xff] %v3923_v17  ;;  %v1644_v22 = vpop.f32.mrf.mxu0  ;;  %v1536_v17 = vadd.f32 %v3795_v44, %v1423_v51  ;;  %v1542_v44 = vadd.f32 %v3803_v37, %v1429_v35  ;;  %v1546_v37 = vadd.f32 %v3811_v40, %v1433_v43  ;;  %v1552_v40 = vadd.f32 %v3819_v55, %v1439_v3 }
 0x1b8   : > { %v3928_v33 = vpop.f32.mrf.mxu1  ;;  %v1645_v46 = vadd.f32 %v1644_v22, %v1532_v6  ;;  %v1556_v55 = vadd.f32 %v3827_v9, %v1443_v47  ;;  %v1562_v9 = vadd.f32 %v3835_v38, %v1449_v7  ;;  %v1566_v38 = vadd.f32 %v3843_v61, %v1453_v58 }
 0x1b9   : > { %4191 = vst [vmem:[#allocation32_spill] sm:$0xff] %v3928_v33  ;;  %v1646_v56 = vpop.f32.mrf.mxu0  ;;  %v1538_v33 = vadd.f32 %v3799_v36, %v1425_v60  ;;  %v1544_v36 = vadd.f32 %v3807_v0, %v1431_v18  ;;  %v1548_v0 = vadd.f32 %v3815_v4, %v1435_v57  ;;  %v1554_v4 = vadd.f32 %v3823_v2, %v1441_v28 }
 0x1ba   : > { %v3933_v48 = vpop.f32.mrf.mxu1  ;;  %v1647_v50 = vadd.f32 %v1646_v56, %v1534_v34  ;;  %v2014_v49 = vmax.f32 %v1645_v46, 0.0  ;;  %v1558_v2 = vadd.f32 %v3831_v11, %v1445_v24  ;;  %v1564_v11 = vadd.f32 %v3839_v27, %v1451_v10 }
 0x1bb   : > { %v1648_v62 = vpop.f32.mrf.mxu0  ;;  %v1568_v27 = vadd.f32 %v3847_v59, %v1455_v42  ;;  %v1572_v61 = vadd.f32 %v3851_v52, %v1459_v29  ;;  %v1574_v59 = vadd.f32 %v3855_v19, %v1461_v15  ;;  %v1576_v52 = vadd.f32 %v3859_v14, %v1463_v63 }
 0x1bc   : > { %v3938_v41 = vpop.f32.mrf.mxu1  ;;  %v2015_v13 = vmax.f32 %v1647_v50, 0.0  ;;  %v1649_v22 = vadd.f32 %v1648_v62, %v1536_v17  ;;  %v1578_v19 = vadd.f32 %v3863_v12, %v1465_v53  ;;  %v1582_v14 = vadd.f32 %v3867_v23, %v1469_v21 }
 0x1bd   : > { %v1650_v6 = vpop.f32.mrf.mxu0  ;;  %v1584_v12 = vadd.f32 %v3871_v39, %v1471_v20  ;;  %v1586_v23 = vadd.f32 %v3875_v1, %v1473_v54  ;;  %v1588_v39 = vadd.f32 %v3879_v31, %v1475_v16  ;;  %v4192_v1 = vld [vmem:[#allocation18_spill] sm:$0xff]  ;;  %v4194_v31 = vld [vmem:[#allocation19_spill] sm:$0xff] }
 0x1be   : > { %v3943_v32 = vpop.f32.mrf.mxu1  ;;  %v1651_v56 = vadd.f32 %v1650_v6, %v1538_v33  ;;  %2184 = vmatprep.mubr.f32.mxu0 %v2015_v13  ;;  %v2017_v60 = vmax.f32 %v1649_v22, 0.0 }
 0x1bf   : > { %v1654_v51 = vpop.f32.mrf.mxu0  ;;  %2185 = vmatmul.mubr.f32.vlgmr.msra.gmra.mxu0 %v2014_v49 }
 0x1c0   : > { %v3948_v34 = vpop.f32.mrf.mxu1  ;;  %v2018_v46 = vmax.f32 %v1651_v56, 0.0  ;;  %v1655_v50 = vadd.f32 %v1654_v51, %v1542_v44 }
 0x1c1   : > { %v1656_v17 = vpop.f32.mrf.mxu0 }
 0x1c2   : > { %v3953_v33 = vpop.f32.mrf.mxu1  ;;  %v1657_v62 = vadd.f32 %v1656_v17, %v1544_v36  ;;  %2189 = vmatprep.mubr.f32.mxu0 %v2018_v46  ;;  %v2020_v49 = vmax.f32 %v1655_v50, 0.0 }
 0x1c3   : > { %v1658_v35 = vpop.f32.mrf.mxu0  ;;  %2190 = vmatmul.mubr.f32.gmra.mxu0 %v2017_v60 }
 0x1c4   : > { %v3958_v13 = vpop.f32.mrf.mxu1  ;;  %v2021_v18 = vmax.f32 %v1657_v62, 0.0  ;;  %v1659_v22 = vadd.f32 %v1658_v35, %v1546_v37 }
 0x1c5   : > { %v1660_v6 = vpop.f32.mrf.mxu0 }
 0x1c6   : > { %v3963_v56 = vpop.f32.mrf.mxu1  ;;  %v1661_v44 = vadd.f32 %v1660_v6, %v1548_v0  ;;  %2194 = vmatprep.mubr.f32.mxu0 %v2021_v18  ;;  %v2023_v57 = vmax.f32 %v1659_v22, 0.0 }
 0x1c7   : > { %v1664_v43 = vpop.f32.mrf.mxu0  ;;  %2195 = vmatmul.mubr.f32.gmra.mxu0 %v2020_v49 }
 0x1c8   : > { %v3968_v51 = vpop.f32.mrf.mxu1  ;;  %v2024_v36 = vmax.f32 %v1661_v44, 0.0  ;;  %v1665_v46 = vadd.f32 %v1664_v43, %v1552_v40 }
 0x1c9   : > { %v1666_v60 = vpop.f32.mrf.mxu0 }
 0x1ca   : > { %v3973_v50 = vpop.f32.mrf.mxu1  ;;  %v1667_v17 = vadd.f32 %v1666_v60, %v1554_v4  ;;  %2199 = vmatprep.mubr.f32.mxu0 %v2024_v36  ;;  %v2026_v35 = vmax.f32 %v1665_v46, 0.0 }
 0x1cb   : > { %v1668_v62 = vpop.f32.mrf.mxu0  ;;  %2200 = vmatmul.mubr.f32.gmra.mxu0 %v2023_v57 }
 0x1cc   : > { %v3978_v37 = vpop.f32.mrf.mxu1  ;;  %v2027_v3 = vmax.f32 %v1667_v17, 0.0  ;;  %v1669_v0 = vadd.f32 %v1668_v62, %v1556_v55 }
 0x1cd   : > { %v1670_v28 = vpop.f32.mrf.mxu0 }
 0x1ce   : > { %v3983_v18 = vpop.f32.mrf.mxu1  ;;  %v1671_v49 = vadd.f32 %v1670_v28, %v1558_v2  ;;  %2204 = vmatprep.mubr.f32.mxu0 %v2027_v3  ;;  %v2029_v40 = vmax.f32 %v1669_v0, 0.0 }
 0x1cf   : > { %v1674_v22 = vpop.f32.mrf.mxu0  ;;  %2205 = vmatmul.mubr.f32.gmra.mxu0 %v2026_v35 }
 0x1d0   : > { %v3988_v6 = vpop.f32.mrf.mxu1  ;;  %v2030_v44 = vmax.f32 %v1671_v49, 0.0  ;;  %v1675_v47 = vadd.f32 %v1674_v22, %v1562_v9 }
 0x1d1   : > { %v1676_v43 = vpop.f32.mrf.mxu0 }
 0x1d2   : > { %v3993_v4 = vpop.f32.mrf.mxu1  ;;  %v1677_v24 = vadd.f32 %v1676_v43, %v1564_v11  ;;  %2209 = vmatprep.mubr.f32.mxu0 %v2030_v44  ;;  %v2032_v60 = vmax.f32 %v1675_v47, 0.0 }
 0x1d3   : > { %v1678_v36 = vpop.f32.mrf.mxu0  ;;  %2210 = vmatmul.mubr.f32.gmra.mxu0 %v2029_v40 }
 0x1d4   : > { %v3998_v57 = vpop.f32.mrf.mxu1  ;;  %v2033_v46 = vmax.f32 %v1677_v24, 0.0  ;;  %v1679_v17 = vadd.f32 %v1678_v36, %v1566_v38 }
 0x1d5   : > { %v1680_v55 = vpop.f32.mrf.mxu0 }
 0x1d6   : > { %v4003_v7 = vpop.f32.mrf.mxu1  ;;  %v1681_v62 = vadd.f32 %v1680_v55, %v1568_v27  ;;  %2214 = vmatprep.mubr.f32.mxu0 %v2033_v46  ;;  %v2035_v35 = vmax.f32 %v1679_v17, 0.0 }
 0x1d7   : > { %v1684_v2 = vpop.f32.mrf.mxu0  ;;  %2215 = vmatmul.mubr.f32.gmra.mxu0 %v2032_v60 }
 0x1d8   : > { %v4008_v10 = vpop.f32.mrf.mxu1  ;;  %v2036_v3 = vmax.f32 %v1681_v62, 0.0  ;;  %v1685_v0 = vadd.f32 %v1684_v2, %v1572_v61 }
 0x1d9   : > { %v1686_v28 = vpop.f32.mrf.mxu0 }
 0x1da   : > { %v4013_v49 = vpop.f32.mrf.mxu1  ;;  %v1687_v9 = vadd.f32 %v1686_v28, %v1574_v59  ;;  %2219 = vmatprep.mubr.f32.mxu0 %v2036_v3  ;;  %v2038_v42 = vmax.f32 %v1685_v0, 0.0  ;;  %v1592_v3 = vadd.f32 %v4192_v1, %v1479_v45 }
 0x1db   : > { %v1688_v58 = vpop.f32.mrf.mxu0  ;;  %2220 = vmatmul.mubr.f32.gmra.mxu0 %v2035_v35  ;;  %v1483_v35 = vadd.f32 %v4193_v26, %v3900_v25 }
 0x1dc   : > { %v4018_v22 = vpop.f32.mrf.mxu1  ;;  %v2039_v11 = vmax.f32 %v1687_v9, 0.0  ;;  %v1689_v44 = vadd.f32 %v1688_v58, %v1576_v52  ;;  %v1594_v9 = vadd.f32 %v4194_v31, %v1481_v5  ;;  %v1485_v52 = vadd.f32 %v4195_v30, %v3907_v8 }
 0x1dd   : > { %v1690_v40 = vpop.f32.mrf.mxu0 }
 0x1de   : > { %v4023_v47 = vpop.f32.mrf.mxu1  ;;  %v1691_v43 = vadd.f32 %v1690_v40, %v1578_v19  ;;  %2224 = vmatprep.mubr.f32.mxu0 %v2039_v11  ;;  %v2041_v36 = vmax.f32 %v1689_v44, 0.0  ;;  %v4196_v44 = vld [vmem:[#allocation21_spill] sm:$0xff] }
 0x1df   : > { %v1694_v24 = vpop.f32.mrf.mxu0  ;;  %2225 = vmatmul.mubr.f32.gmra.mxu0 %v2038_v42  ;;  %v1596_v40 = vadd.f32 %v4196_v44, %v1483_v35 }
 0x1e0   : > { %v4028_v38 = vpop.f32.mrf.mxu1  ;;  %v2042_v29 = vmax.f32 %v1691_v43, 0.0  ;;  %v1695_v27 = vadd.f32 %v1694_v24, %v1582_v14  ;;  %v4197_v43 = vld [vmem:[#allocation24_spill] sm:$0xff] }
 0x1e1   : > { %v1696_v15 = vpop.f32.mrf.mxu0  ;;  %v1489_v14 = vadd.f32 %v4197_v43, %v3900_v25 }
 0x1e2   : > { %v4033_v46 = vpop.f32.mrf.mxu1  ;;  %v1697_v60 = vadd.f32 %v1696_v15, %v1584_v12  ;;  %2229 = vmatprep.mubr.f32.mxu0 %v2042_v29  ;;  %v2044_v61 = vmax.f32 %v1695_v27, 0.0  ;;  %v4198_v12 = vld [vmem:[#allocation23_spill] sm:$0xff]  ;;  %v4199_v29 = vld [vmem:[#allocation26_spill] sm:$0xff] }
 0x1e3   : > { %v1698_v17 = vpop.f32.mrf.mxu0  ;;  %2230 = vmatmul.mubr.f32.gmra.mxu0 %v2041_v36  ;;  %v1598_v16 = vadd.f32 %v4198_v12, %v1485_v52  ;;  %v1491_v36 = vadd.f32 %v4199_v29, %v3907_v8 }
 0x1e4   : > { %v4038_v55 = vpop.f32.mrf.mxu1  ;;  %v2045_v62 = vmax.f32 %v1697_v60, 0.0  ;;  %v1699_v63 = vadd.f32 %v1698_v17, %v1586_v23 }
 0x1e5   : > { %v1700_v2 = vpop.f32.mrf.mxu0 }
 0x1e6   : > { %v4043_v59 = vpop.f32.mrf.mxu1  ;;  %v1701_v53 = vadd.f32 %v1700_v2, %v1588_v39  ;;  %2234 = vmatprep.mubr.f32.mxu0 %v2045_v62  ;;  %v2047_v58 = vmax.f32 %v1699_v63, 0.0  ;;  %v4200_v39 = vld [vmem:[#allocation25_spill] sm:$0xff]  ;;  %v4201_v62 = vld [vmem:[#allocation28_spill] sm:$0xff] }
 0x1e7   : > { %v1704_v0 = vpop.f32.mrf.mxu0  ;;  %2235 = vmatmul.mubr.f32.gmra.mxu0 %v2044_v61  ;;  %v1602_v5 = vadd.f32 %v4200_v39, %v1489_v14  ;;  %v1493_v61 = vadd.f32 %v4201_v62, %v3900_v25 }
 0x1e8   : > { %v4048_v28 = vpop.f32.mrf.mxu1  ;;  %v2048_v21 = vmax.f32 %v1701_v53, 0.0  ;;  %v1705_v19 = vadd.f32 %v1704_v0, %v1592_v3  ;;  %v4202_v53 = vld [vmem:[#allocation27_spill] sm:$0xff]  ;;  %v4203_v3 = vld [vmem:[#allocation30_spill] sm:$0xff] }
 0x1e9   : > { %v1706_v20 = vpop.f32.mrf.mxu0  ;;  %v1604_v1 = vadd.f32 %v4202_v53, %v1491_v36  ;;  %v1495_v26 = vadd.f32 %v4203_v3, %v3907_v8 }
 0x1ea   : > { %v4053_v11 = vpop.f32.mrf.mxu1  ;;  %v1707_v42 = vadd.f32 %v1706_v20, %v1594_v9  ;;  %2239 = vmatprep.mubr.f32.mxu0 %v2048_v21  ;;  %v2050_v15 = vmax.f32 %v1705_v19, 0.0  ;;  %v4204_v21 = vld [vmem:[#allocation29_spill] sm:$0xff]  ;;  %v4205_v20 = vld [vmem:[#allocation31_spill] sm:$0xff] }
 0x1eb   : > { %v1708_v54 = vpop.f32.mrf.mxu0  ;;  %2240 = vmatmul.mubr.f32.gmra.mxu0 %v2047_v58  ;;  %v1606_v58 = vadd.f32 %v4204_v21, %v1493_v61 }
 0x1ec   : > { %v4058_v24 = vpop.f32.mrf.mxu1  ;;  %v2051_v27 = vmax.f32 %v1707_v42, 0.0  ;;  %v1709_v60 = vadd.f32 %v1708_v54, %v1596_v40  ;;  %v1608_v42 = vadd.f32 %v4205_v20, %v1495_v26  ;;  %v4206_v54 = vld [vmem:[#allocation32_spill] sm:$0xff] }
 0x1ed   : > { %v1710_v23 = vpop.f32.mrf.mxu0  ;;  %v2700_v12 = vadd.f32 %v3933_v48, %v4206_v54 }
 0x1ee   : > { %v4063_v45 = vpop.f32.mrf.mxu1  ;;  %v1711_v17 = vadd.f32 %v1710_v23, %v1598_v16  ;;  %2244 = vmatprep.mubr.f32.mxu0 %v2051_v27  ;;  %v2053_v0 = vmax.f32 %v1709_v60, 0.0 }
 0x1ef   : > { %v1714_v63 = vpop.f32.mrf.mxu0  ;;  %2245 = vmatmul.mubr.f32.gmra.mxu0 %v2050_v15 }
 0x1f0   : > { %v4068_v2 = vpop.f32.mrf.mxu1  ;;  %v2054_v35 = vmax.f32 %v1711_v17, 0.0  ;;  %v1715_v31 = vadd.f32 %v1714_v63, %v1602_v5  ;;  %v4207_v17 = vld [vmem:[#allocation17_spill] sm:$0xff]  ;;  %v2703_v5 = vadd.f32 %v3943_v32, %v3938_v41 }
 0x1f1   : > { %v1716_v9 = vpop.f32.mrf.mxu0  ;;  %v1758_v39 = vadd.f32 %v2700_v12, %v4207_v17 }
 0x1f2   : > { %v4073_v30 = vpop.f32.mrf.mxu1  ;;  %v1717_v52 = vadd.f32 %v1716_v9, %v1604_v1  ;;  %2249 = vmatprep.mubr.f32.mxu0 %v2054_v35  ;;  %v2056_v40 = vmax.f32 %v1715_v31, 0.0  ;;  %v1761_v26 = vadd.f32 %v2703_v5, %v4207_v17  ;;  %v2706_v35 = vadd.f32 %v3953_v33, %v3948_v34 }
 0x1f3   : > { %v1718_v25 = vpop.f32.mrf.mxu0  ;;  %2250 = vmatmul.mubr.f32.gmra.mxu0 %v2053_v0 }
 0x1f4   : > { %v4076_v19 = vpop.f32.mrf.mxu1  ;;  %v2057_v44 = vmax.f32 %v1717_v52, 0.0  ;;  %v1719_v43 = vadd.f32 %v1718_v25, %v1606_v58  ;;  %v1766_v20 = vadd.f32 %v2706_v35, %v4207_v17 }
 0x1f5   : > { %v1720_v8 = vpop.f32.mrf.mxu0 }
 0x1f6   : > { %v4079_v14 = vpop.f32.mrf.mxu1  ;;  %v1721_v16 = vadd.f32 %v1720_v8, %v1608_v42  ;;  %2254 = vmatprep.mubr.f32.mxu0 %v2057_v44  ;;  %v2059_v15 = vmax.f32 %v1719_v43, 0.0  ;;  %v2709_v42 = vadd.f32 %v3963_v56, %v3958_v13 }
 0x1f7   : > { %v2762_v29 = vpop.f32.mrf.mxu0  ;;  %2255 = vmatmul.mubr.f32.gmra.mxu0 %v2056_v40 }
 0x1f8   : > { %v2826_v36 = vpop.f32.mrf.mxu1  ;;  %v2060_v27 = vmax.f32 %v1721_v16, 0.0 }
 0x1f9   : > { %v2763_v60 = vpop.f32.mrf.mxu0 }
 0x1fa   : > { %v2827_v23 = vpop.f32.mrf.mxu1  ;;  %v2764_v62 = vadd.f32 %v2763_v60, %v2762_v29  ;;  %2259 = vmatprep.mubr.f32.mxu0 %v2060_v27  ;;  %v1769_v29 = vadd.f32 %v2709_v42, %v4207_v17 }
 0x1fb   : > { %v2765_v61 = vpop.f32.mrf.mxu0  ;;  %2260 = vmatmul.mubr.f32.gmra.mxu0 %v2059_v15  ;;  %v2828_v53 = vadd.f32 %v2827_v23, %v2826_v36  ;;  %v2712_v36 = vadd.f32 %v3973_v50, %v3968_v51 }
 0x1fc   : > { %v2829_v63 = vpop.f32.mrf.mxu1  ;;  %v1855_v48 = vadd.f32 %v2764_v62, %v1758_v39 }
 0x1fd   : > { %v2766_v1 = vpop.f32.mrf.mxu0 }
 0x1fe   : > { %v2830_v3 = vpop.f32.mrf.mxu1  ;;  %v1952_v0 = vadd.f32 %v2828_v53, %v1855_v48  ;;  %v2767_v31 = vadd.f32 %v2766_v1, %v2765_v61  ;;  %v1774_v61 = vadd.f32 %v2712_v36, %v4207_v17 }
 0x1ff   : > { %v2768_v9 = vpop.f32.mrf.mxu0  ;;  %v2831_v41 = vadd.f32 %v2830_v3, %v2829_v63  ;;  %v2715_v63 = vadd.f32 %v3983_v18, %v3978_v37 }
 0x200   : > { %v2832_v52 = vpop.f32.mrf.mxu1  ;;  %v2016_v21 = vmax.f32 %v1952_v0, 0.0  ;;  %v1858_v32 = vadd.f32 %v2767_v31, %v1761_v26 }
 0x201   : > { %v2769_v58 = vpop.f32.mrf.mxu0  ;;  %v1777_v31 = vadd.f32 %v2715_v63, %v4207_v17 }
 0x202   : > { %v2833_v25 = vpop.f32.mrf.mxu1  ;;  %v1955_v44 = vadd.f32 %v2831_v41, %v1858_v32  ;;  %v2770_v40 = vadd.f32 %v2769_v58, %v2768_v9  ;;  %3018 = vmatprep.mubr.f32.mxu1 %v2016_v21  ;;  %v2718_v9 = vadd.f32 %v3993_v4, %v3988_v6 }
 0x203   : > { %v2771_v43 = vpop.f32.mrf.mxu0  ;;  %v2834_v54 = vadd.f32 %v2833_v25, %v2832_v52 }
 0x204   : > { %v2835_v8 = vpop.f32.mrf.mxu1  ;;  %v2019_v34 = vmax.f32 %v1955_v44, 0.0  ;;  %v1863_v33 = vadd.f32 %v2770_v40, %v1766_v20  ;;  %v1782_v42 = vadd.f32 %v2718_v9, %v4207_v17  ;;  %v2721_v44 = vadd.f32 %v4003_v7, %v3998_v57 }
 0x205   : > { %v2772_v12 = vpop.f32.mrf.mxu0 }
 0x206   : > { %v2836_v16 = vpop.f32.mrf.mxu1  ;;  %v1960_v27 = vadd.f32 %v2834_v54, %v1863_v33  ;;  %v2773_v15 = vadd.f32 %v2772_v12, %v2771_v43  ;;  %3019 = vmatmul.mubr.f32.vlgmr.msra.gmra.mxu1 %v2019_v34 }
 0x207   : > { %v2774_v60 = vpop.f32.mrf.mxu0  ;;  %v2837_v39 = vadd.f32 %v2836_v16, %v2835_v8  ;;  %v1785_v16 = vadd.f32 %v2721_v44, %v4207_v17 }
 0x208   : > { %v2838_v13 = vpop.f32.mrf.mxu1  ;;  %v2022_v56 = vmax.f32 %v1960_v27, 0.0  ;;  %v1866_v23 = vadd.f32 %v2773_v15, %v1769_v29  ;;  %v2724_v29 = vadd.f32 %v4013_v49, %v4008_v10 }
 0x209   : > { %v2775_v5 = vpop.f32.mrf.mxu0 }
 0x20a   : > { %v2839_v62 = vpop.f32.mrf.mxu1  ;;  %v1963_v48 = vadd.f32 %v2837_v39, %v1866_v23  ;;  %v2776_v53 = vadd.f32 %v2775_v5, %v2774_v60  ;;  %3021 = vmatprep.mubr.f32.mxu1 %v2022_v56  ;;  %v1790_v39 = vadd.f32 %v2724_v29, %v4207_v17  ;;  %v2727_v5 = vadd.f32 %v4023_v47, %v4018_v22 }
 0x20b   : > { %v2777_v1 = vpop.f32.mrf.mxu0  ;;  %v2840_v26 = vadd.f32 %v2839_v62, %v2838_v13  ;;  %v2739_v29 = vadd.f32 %v4063_v45, %v4058_v24 }
 0x20c   : > { %v2841_v51 = vpop.f32.mrf.mxu1  ;;  %v2025_v50 = vmax.f32 %v1963_v48, 0.0  ;;  %v1871_v3 = vadd.f32 %v2776_v53, %v1774_v61 }
 0x20d   : > { %v2778_v35 = vpop.f32.mrf.mxu0 }
 0x20e   : > { %v2842_v0 = vpop.f32.mrf.mxu1  ;;  %v1968_v52 = vadd.f32 %v2840_v26, %v1871_v3  ;;  %v2779_v21 = vadd.f32 %v2778_v35, %v2777_v1  ;;  %3022 = vmatmul.mubr.f32.gmra.mxu1 %v2025_v50  ;;  %v1793_v50 = vadd.f32 %v2727_v5, %v4207_v17  ;;  %v2730_v3 = vadd.f32 %v4033_v46, %v4028_v38 }
 0x20f   : > { %v2780_v32 = vpop.f32.mrf.mxu0  ;;  %v2843_v58 = vadd.f32 %v2842_v0, %v2841_v51 }
 0x210   : > { %v2844_v37 = vpop.f32.mrf.mxu1  ;;  %v2028_v18 = vmax.f32 %v1968_v52, 0.0  ;;  %v1874_v41 = vadd.f32 %v2779_v21, %v1777_v31 }
 0x211   : > { %v2781_v25 = vpop.f32.mrf.mxu0 }
 0x212   : > { %v2845_v20 = vpop.f32.mrf.mxu1  ;;  %v1971_v40 = vadd.f32 %v2843_v58, %v1874_v41  ;;  %v2782_v43 = vadd.f32 %v2781_v25, %v2780_v32  ;;  %3024 = vmatprep.mubr.f32.mxu1 %v2028_v18  ;;  %v1798_v32 = vadd.f32 %v2730_v3, %v4207_v17 }
 0x213   : > { %v2783_v8 = vpop.f32.mrf.mxu0  ;;  %v2846_v33 = vadd.f32 %v2845_v20, %v2844_v37  ;;  %v2733_v37 = vadd.f32 %v4043_v59, %v4038_v55 }
 0x214   : > { %v2847_v6 = vpop.f32.mrf.mxu1  ;;  %v2031_v4 = vmax.f32 %v1971_v40, 0.0  ;;  %v1879_v34 = vadd.f32 %v2782_v43, %v1782_v42  ;;  %v2736_v43 = vadd.f32 %v4053_v11, %v4048_v28 }
 0x215   : > { %v2784_v54 = vpop.f32.mrf.mxu0  ;;  %v1801_v40 = vadd.f32 %v2733_v37, %v4207_v17 }
 0x216   : > { %v2848_v12 = vpop.f32.mrf.mxu1  ;;  %v1976_v36 = vadd.f32 %v2846_v33, %v1879_v34  ;;  %v2785_v27 = vadd.f32 %v2784_v54, %v2783_v8  ;;  %3025 = vmatmul.mubr.f32.gmra.mxu1 %v2031_v4 }
 0x217   : > { %v2786_v15 = vpop.f32.mrf.mxu0  ;;  %v2849_v13 = vadd.f32 %v2848_v12, %v2847_v6 }
 0x218   : > { %v2850_v57 = vpop.f32.mrf.mxu1  ;;  %v2034_v7 = vmax.f32 %v1976_v36, 0.0  ;;  %v1882_v60 = vadd.f32 %v2785_v27, %v1785_v16  ;;  %v1806_v16 = vadd.f32 %v2736_v43, %v4207_v17 }
 0x219   : > { %v2787_v56 = vpop.f32.mrf.mxu0 }
 0x21a   : > { %v2851_v23 = vpop.f32.mrf.mxu1  ;;  %v1979_v62 = vadd.f32 %v2849_v13, %v1882_v60  ;;  %v2788_v61 = vadd.f32 %v2787_v56, %v2786_v15  ;;  %3027 = vmatprep.mubr.f32.mxu1 %v2034_v7  ;;  %v1809_v56 = vadd.f32 %v2739_v29, %v4207_v17 }
 0x21b   : > { %v2789_v63 = vpop.f32.mrf.mxu0  ;;  %v2852_v53 = vadd.f32 %v2851_v23, %v2850_v57  ;;  %v2742_v23 = vadd.f32 %v4073_v30, %v4068_v2 }
 0x21c   : > { %v2853_v10 = vpop.f32.mrf.mxu1  ;;  %v2037_v49 = vmax.f32 %v1979_v62, 0.0  ;;  %v1887_v48 = vadd.f32 %v2788_v61, %v1790_v39 }
 0x21d   : > { %v2790_v1 = vpop.f32.mrf.mxu0 }
 0x21e   : > { %v2854_v51 = vpop.f32.mrf.mxu1  ;;  %v1984_v26 = vadd.f32 %v2852_v53, %v1887_v48  ;;  %v2791_v35 = vadd.f32 %v2790_v1, %v2789_v63  ;;  %3028 = vmatmul.mubr.f32.gmra.mxu1 %v2037_v49  ;;  %v1814_v48 = vadd.f32 %v2742_v23, %v4207_v17  ;;  %v2745_v53 = vadd.f32 %v4079_v14, %v4076_v19 }
 0x21f   : > { %v2792_v0 = vpop.f32.mrf.mxu0  ;;  %v2855_v9 = vadd.f32 %v2854_v51, %v2853_v10 }
 0x220   : > { %v2856_v22 = vpop.f32.mrf.mxu1  ;;  %v2040_v47 = vmax.f32 %v1984_v26, 0.0  ;;  %v1890_v31 = vadd.f32 %v2791_v35, %v1793_v50 }
 0x221   : > { %v2793_v52 = vpop.f32.mrf.mxu0 }
 0x222   : > { %v2857_v21 = vpop.f32.mrf.mxu1  ;;  %v1987_v18 = vadd.f32 %v2855_v9, %v1890_v31  ;;  %v2794_v41 = vadd.f32 %v2793_v52, %v2792_v0  ;;  %3030 = vmatprep.mubr.f32.mxu1 %v2040_v47 }
 0x223   : > { %v2795_v58 = vpop.f32.mrf.mxu0  ;;  %v2858_v20 = vadd.f32 %v2857_v21, %v2856_v22  ;;  %v1817_v22 = vadd.f32 %v2745_v53, %v4207_v17 }
 0x224   : > { %v2859_v38 = vpop.f32.mrf.mxu1  ;;  %v2043_v46 = vmax.f32 %v1987_v18, 0.0  ;;  %v1895_v25 = vadd.f32 %v2794_v41, %v1798_v32 }
 0x225   : > { %v2796_v42 = vpop.f32.mrf.mxu0 }
 0x226   : > { %v2860_v44 = vpop.f32.mrf.mxu1  ;;  %v1992_v8 = vadd.f32 %v2858_v20, %v1895_v25  ;;  %v2797_v6 = vadd.f32 %v2796_v42, %v2795_v58  ;;  %3031 = vmatmul.mubr.f32.gmra.mxu1 %v2043_v46 }
 0x227   : > { %v2798_v4 = vpop.f32.mrf.mxu0  ;;  %v2861_v33 = vadd.f32 %v2860_v44, %v2859_v38 }
 0x228   : > { %v2862_v55 = vpop.f32.mrf.mxu1  ;;  %v2046_v59 = vmax.f32 %v1992_v8, 0.0  ;;  %v1898_v34 = vadd.f32 %v2797_v6, %v1801_v40 }
 0x229   : > { %v2799_v54 = vpop.f32.mrf.mxu0 }
 0x22a   : > { %v2863_v12 = vpop.f32.mrf.mxu1  ;;  %v1995_v36 = vadd.f32 %v2861_v33, %v1898_v34  ;;  %v2800_v27 = vadd.f32 %v2799_v54, %v2798_v4  ;;  %3033 = vmatprep.mubr.f32.mxu1 %v2046_v59  ;;  %v4129_v54 = vpop.permute.xlu0 %2117 }
 0x22b   : > { %v2801_v15 = vpop.f32.mrf.mxu0  ;;  %v2864_v7 = vadd.f32 %v2863_v12, %v2862_v55 }
 0x22c   : > { %v2865_v28 = vpop.f32.mrf.mxu1  ;;  %v2049_v11 = vmax.f32 %v1995_v36, 0.0  ;;  %v1903_v57 = vadd.f32 %v2800_v27, %v1806_v16 }
 0x22d   : > { %v2802_v60 = vpop.f32.mrf.mxu0 }
 0x22e   : > { %v2866_v13 = vpop.f32.mrf.mxu1  ;;  %v2000_v39 = vadd.f32 %v2864_v7, %v1903_v57  ;;  %v2803_v5 = vadd.f32 %v2802_v60, %v2801_v15  ;;  %3034 = vmatmul.mubr.f32.gmra.mxu1 %v2049_v11 }
 0x22f   : > { %v2804_v62 = vpop.f32.mrf.mxu0  ;;  %v2867_v63 = vadd.f32 %v2866_v13, %v2865_v28 }
 0x230   : > { %v2868_v24 = vpop.f32.mrf.mxu1  ;;  %v2052_v45 = vmax.f32 %v2000_v39, 0.0  ;;  %v1906_v61 = vadd.f32 %v2803_v5, %v1809_v56 }
 0x231   : > { %v2805_v10 = vpop.f32.mrf.mxu0 }
 0x232   : > { %v2869_v49 = vpop.f32.mrf.mxu1  ;;  %v2003_v1 = vadd.f32 %v2867_v63, %v1906_v61  ;;  %v2806_v51 = vadd.f32 %v2805_v10, %v2804_v62  ;;  %3036 = vmatprep.mubr.f32.mxu1 %v2052_v45 }
 0x233   : > { %v2807_v50 = vpop.f32.mrf.mxu0  ;;  %v2870_v26 = vadd.f32 %v2869_v49, %v2868_v24 }
 0x234   : > { %v2871_v2 = vpop.f32.mrf.mxu1  ;;  %v2055_v30 = vmax.f32 %v2003_v1, 0.0  ;;  %v1911_v3 = vadd.f32 %v2806_v51, %v1814_v48 }
 0x235   : > { %v2808_v35 = vpop.f32.mrf.mxu0 }
 0x236   : > { %v2872_v0 = vpop.f32.mrf.mxu1  ;;  %v2008_v47 = vadd.f32 %v2870_v26, %v1911_v3  ;;  %v2809_v31 = vadd.f32 %v2808_v35, %v2807_v50  ;;  %3037 = vmatmul.mubr.f32.gmra.mxu1 %v2055_v30 }
 0x237   : > { %v2873_v21 = vadd.f32 %v2872_v0, %v2871_v2 }
 0x238   : > { %v2058_v9 = vmax.f32 %v2008_v47, 0.0  ;;  %v1914_v52 = vadd.f32 %v2809_v31, %v1817_v22 }
 0x23a   : > { %v2011_v32 = vadd.f32 %v2873_v21, %v1914_v52  ;;  %3039 = vmatprep.mubr.f32.mxu1 %v2058_v9 }
 0x23c   : > { %v2061_v19 = vmax.f32 %v2011_v32, 0.0 }
 0x23e   : > { %3040 = vmatmul.mubr.f32.gmra.mxu1 %v2061_v19 }
 0x27f   : > { %v2906_v14 = vpop.f32.mrf.mxu0 }
 0x281   : > { %v2907_v37 = vpop.f32.mrf.mxu0 }
 0x282   : > { %v2908_v33 = vadd.f32 %v2907_v37, %v2906_v14 }
 0x283   : > { %v2909_v18 = vpop.f32.mrf.mxu0 }
 0x284   : > { %v2187_v27 = vadd.f32 %v2908_v33, %v4129_v54 }
 0x285   : > { %v2910_v41 = vpop.f32.mrf.mxu0 }
 0x286   : > { %v2911_v59 = vadd.f32 %v2910_v41, %v2909_v18 }
 0x287   : > { %v2912_v58 = vpop.f32.mrf.mxu0 }
 0x288   : > { %v2192_v12 = vadd.f32 %v2911_v59, %v4129_v54 }
 0x289   : > { %v2913_v38 = vpop.f32.mrf.mxu0 }
 0x28a   : > { %v2914_v7 = vadd.f32 %v2913_v38, %v2912_v58 }
 0x28b   : > { %v2915_v46 = vpop.f32.mrf.mxu0 }
 0x28c   : > { %v2197_v39 = vadd.f32 %v2914_v7, %v4129_v54 }
 0x28d   : > { %v2916_v25 = vpop.f32.mrf.mxu0 }
 0x28e   : > { %v2917_v28 = vadd.f32 %v2916_v25, %v2915_v46 }
 0x28f   : > { %v2918_v20 = vpop.f32.mrf.mxu0 }
 0x290   : > { %v2202_v60 = vadd.f32 %v2917_v28, %v4129_v54 }
 0x291   : > { %v2919_v17 = vpop.f32.mrf.mxu0 }
 0x292   : > { %v2920_v61 = vadd.f32 %v2919_v17, %v2918_v20 }
 0x293   : > { %v2921_v42 = vpop.f32.mrf.mxu0 }
 0x294   : > { %v2207_v53 = vadd.f32 %v2920_v61, %v4129_v54 }
 0x295   : > { %v2922_v44 = vpop.f32.mrf.mxu0 }
 0x296   : > { %v2923_v62 = vadd.f32 %v2922_v44, %v2921_v42 }
 0x297   : > { %v2924_v40 = vpop.f32.mrf.mxu0 }
 0x298   : > { %v2212_v63 = vadd.f32 %v2923_v62, %v4129_v54 }
 0x299   : > { %v2925_v43 = vpop.f32.mrf.mxu0 }
 0x29a   : > { %v2926_v30 = vadd.f32 %v2925_v43, %v2924_v40 }
 0x29b   : > { %v2927_v8 = vpop.f32.mrf.mxu0 }
 0x29c   : > { %v2217_v22 = vadd.f32 %v2926_v30, %v4129_v54 }
 0x29d   : > { %v2928_v6 = vpop.f32.mrf.mxu0 }
 0x29e   : > { %v2929_v51 = vadd.f32 %v2928_v6, %v2927_v8 }
 0x29f   : > { %v2930_v4 = vpop.f32.mrf.mxu0 }
 0x2a0   : > { %v2222_v3 = vadd.f32 %v2929_v51, %v4129_v54 }
 0x2a1   : > { %v2931_v55 = vpop.f32.mrf.mxu0 }
 0x2a2   : > { %v2932_v21 = vadd.f32 %v2931_v55, %v2930_v4 }
 0x2a3   : > { %v2933_v34 = vpop.f32.mrf.mxu0 }
 0x2a4   : > { %v2227_v18 = vadd.f32 %v2932_v21, %v4129_v54 }
 0x2a5   : > { %v2934_v16 = vpop.f32.mrf.mxu0 }
 0x2a6   : > { %v2935_v31 = vadd.f32 %v2934_v16, %v2933_v34 }
 0x2a7   : > { %v2936_v57 = vpop.f32.mrf.mxu0 }
 0x2a8   : > { %v2232_v32 = vadd.f32 %v2935_v31, %v4129_v54 }
 0x2a9   : > { %v2937_v13 = vpop.f32.mrf.mxu0 }
 0x2aa   : > { %v2938_v25 = vadd.f32 %v2937_v13, %v2936_v57 }
 0x2ab   : > { %v2939_v45 = vpop.f32.mrf.mxu0 }
 0x2ac   : > { %v2237_v40 = vadd.f32 %v2938_v25, %v4129_v54 }
 0x2ad   : > { %v2940_v10 = vpop.f32.mrf.mxu0 }
 0x2ae   : > { %v2941_v58 = vadd.f32 %v2940_v10, %v2939_v45 }
 0x2af   : > { %v2942_v2 = vpop.f32.mrf.mxu0 }
 0x2b0   : > { %v2242_v20 = vadd.f32 %v2941_v58, %v4129_v54 }
 0x2b1   : > { %v2943_v26 = vpop.f32.mrf.mxu0 }
 0x2b2   : > { %v2944_v55 = vadd.f32 %v2943_v26, %v2942_v2 }
 0x2b3   : > { %v2945_v52 = vpop.f32.mrf.mxu0 }
 0x2b4   : > { %v2247_v16 = vadd.f32 %v2944_v55, %v4129_v54 }
 0x2b5   : > { %v2946_v19 = vpop.f32.mrf.mxu0 }
 0x2b6   : > { %v2947_v8 = vadd.f32 %v2946_v19, %v2945_v52 }
 0x2b7   : > { %v2948_v46 = vpop.f32.mrf.mxu0 }
 0x2b8   : > { %v2252_v59 = vadd.f32 %v2947_v8, %v4129_v54 }
 0x2b9   : > { %v2949_v17 = vpop.f32.mrf.mxu0 }
 0x2bb   : > { %v2951_v4 = vpop.f32.mrf.mxu0 }
 0x2bd   : > { %v2952_v34 = vpop.f32.mrf.mxu0 }
 0x2c6   : > { %v3020_v29 = vpop.f32.mrf.mxu1 }
 0x2c7   : > { %v2337_v36 = vadd.f32 %v3020_v29, %v2192_v12 }
 0x2c8   : > { %v2331_v15 = vpop.f32.mrf.mxu1 }
 0x2c9   : > { %2411 = vst [vmem:[%s3561_s7 + $0x8] sm:$0xff] %v2337_v36  ;;  %v2332_v11 = vadd.f32 %v2331_v15, %v2187_v27  ;;  %v2953_v36 = vadd.f32 %v2952_v34, %v2951_v4  ;;  %v2950_v15 = vadd.f32 %v2949_v17, %v2948_v46 }
 0x2cb   : > { %2410 = vst [vmem:[%s3561_s7] sm:$0xff] %v2332_v11  ;;  %v2262_v28 = vadd.f32 %v2953_v36, %v4129_v54  ;;  %v2257_v7 = vadd.f32 %v2950_v15, %v4129_v54 }
 0x2ce   : > { %v3023_v56 = vpop.f32.mrf.mxu1 }
 0x2cf   : > { %v2347_v23 = vadd.f32 %v3023_v56, %v2202_v60 }
 0x2d0   : > { %v2341_v5 = vpop.f32.mrf.mxu1 }
 0x2d1   : > { %2413 = vst [vmem:[%s3561_s7 + $0x18] sm:$0xff] %v2347_v23  ;;  %v2342_v24 = vadd.f32 %v2341_v5, %v2197_v39 }
 0x2d3   : > { %2412 = vst [vmem:[%s3561_s7 + $0x10] sm:$0xff] %v2342_v24 }
 0x2d6   : > { %v3026_v49 = vpop.f32.mrf.mxu1 }
 0x2d7   : > { %v2357_v48 = vadd.f32 %v3026_v49, %v2212_v63 }
 0x2d8   : > { %v2351_v1 = vpop.f32.mrf.mxu1 }
 0x2d9   : > { %2415 = vst [vmem:[%s3561_s7 + $0x28] sm:$0xff] %v2357_v48  ;;  %v2352_v50 = vadd.f32 %v2351_v1, %v2207_v53 }
 0x2db   : > { %2414 = vst [vmem:[%s3561_s7 + $0x20] sm:$0xff] %v2352_v50 }
 0x2de   : > { %v3029_v35 = vpop.f32.mrf.mxu1 }
 0x2df   : > { %v2367_v0 = vadd.f32 %v3029_v35, %v2222_v3 }
 0x2e0   : > { %v2361_v47 = vpop.f32.mrf.mxu1 }
 0x2e1   : > { %2417 = vst [vmem:[%s3561_s7 + $0x38] sm:$0xff] %v2367_v0  ;;  %v2362_v9 = vadd.f32 %v2361_v47, %v2217_v22 }
 0x2e3   : > { %2416 = vst [vmem:[%s3561_s7 + $0x30] sm:$0xff] %v2362_v9 }
 0x2e6   : > { %v3032_v14 = vpop.f32.mrf.mxu1 }
 0x2e7   : > { %v2377_v37 = vadd.f32 %v3032_v14, %v2232_v32 }
 0x2e8   : > { %v2371_v41 = vpop.f32.mrf.mxu1 }
 0x2e9   : > { %2419 = vst [vmem:[%s3561_s7 + $0x48] sm:$0xff] %v2377_v37  ;;  %v2372_v38 = vadd.f32 %v2371_v41, %v2227_v18 }
 0x2eb   : > { %2418 = vst [vmem:[%s3561_s7 + $0x40] sm:$0xff] %v2372_v38 }
 0x2ee   : > { %v3035_v42 = vpop.f32.mrf.mxu1 }
 0x2ef   : > { %v2387_v44 = vadd.f32 %v3035_v42, %v2242_v20 }
 0x2f0   : > { %v2381_v43 = vpop.f32.mrf.mxu1 }
 0x2f1   : > { %2421 = vst [vmem:[%s3561_s7 + $0x58] sm:$0xff] %v2387_v44  ;;  %v2382_v6 = vadd.f32 %v2381_v43, %v2237_v40 }
 0x2f3   : > { %2420 = vst [vmem:[%s3561_s7 + $0x50] sm:$0xff] %v2382_v6 }
 0x2f6   : > { %v3038_v33 = vpop.f32.mrf.mxu1 }
 0x2f7   : > { %v2397_v12 = vadd.f32 %v3038_v33, %v2252_v59 }
 0x2f8   : > { %v2391_v29 = vpop.f32.mrf.mxu1 }
 0x2f9   : > { %2423 = vst [vmem:[%s3561_s7 + $0x68] sm:$0xff] %v2397_v12  ;;  %v2392_v27 = vadd.f32 %v2391_v29, %v2247_v16 }
 0x2fb   : > { %2422 = vst [vmem:[%s3561_s7 + $0x60] sm:$0xff] %v2392_v27 }
 0x2fe   : > { %v3041_v11 = vpop.f32.mrf.mxu1 }
 0x2ff   : > { %v2407_v57 = vadd.f32 %v3041_v11, %v2262_v28 }
 0x300   : > { %v2401_v60 = vpop.f32.mrf.mxu1 }
 0x301   : > { %2425 = vst [vmem:[%s3561_s7 + $0x78] sm:$0xff] %v2407_v57  ;;  %v2402_v13 = vadd.f32 %v2401_v60, %v2257_v7 }
 0x303   : > { %2424 = vst [vmem:[%s3561_s7 + $0x70] sm:$0xff] %v2402_v13 }
 0x304 PF: > { %s26_s0 = sadd.s32 1, %s3424_s0  }
 0x305   : > { %p23_p9 = scmp.ge.s32.totalorder %s26_s0, 4  }
 0x307   :  { %25 = sbr.rel (!%p23_p9) target bundleno = 17 (0x11), region = 96 }
 0x30c   :  { %2448 = vsyncpa [#allocation8], 1 }
 0x30d   :  { %2450 = vsyncpa [#allocation8 + $0x1], 1 }
 0x30e   :  { %2451 = vsyncpa [#allocation10], 1 }
 0x30f   :  { %2452 = vsyncmov [#allocation3] }
 0x312   :  { %s2453_s29 = vpop.sfrf %2452 }
 0x313   :  { %p2681_p12 = scmp.ne.s32.totalorder %s2453_s29, 0 }
 0x315   :  { %2457 = shalt.err (%p2681_p12)  }

</bundles_post_ra>
